<compile_context>
chip_gen: v6e
topology: v6e:2x2x1
jax: 0.10.0
libtpu: 0.0.40
codegen_flags: <defaults>
</compile_context>

<pallas_src>
import functools

import jax
import jax.numpy as jnp
from jax import lax
from jax.experimental import pallas as pl
from jax.experimental.pallas import tpu as pltpu


def _log_sigmoid(x):
    # numerically stable log(sigmoid(x)) = -(max(-x, 0) + log1p(exp(-|x|)))
    return -(jnp.maximum(-x, 0.0) + jnp.log1p(jnp.exp(-jnp.abs(x))))


def _w2v_kernel(in_lbl_ref,        # (1, 1, TB) int32  center-word labels (batch on lanes)
                ctx_lbl_ref,       # (1, C, TB) int32  pos|neg context labels
                in_tab_t_ref,      # (D, V) f32  transposed in-embedding table (VMEM resident)
                out_tab_t_ref,     # (D, V) f32  transposed out-embedding table
                out_ref,           # (1, 1, TB) f32  per-sample loss (lane dense)
                *, num_pos, num_ctx, vocab, batch, tile_b):
    base = pl.program_id(0) * tile_b

    in_tab_t = in_tab_t_ref[...]                      # (D, V)
    out_tab_t = out_tab_t_ref[...]                    # (D, V)
    in_lbl = in_lbl_ref[0]                            # (1, TB)
    ctx_lbl = ctx_lbl_ref[0]                          # (C, TB)

    # vocab index on sublanes, batch sample on lanes
    v_iota = lax.broadcasted_iota(jnp.int32, (vocab, tile_b), 0)

    # ---- fused gather of the center-word embeddings: one-hot @ table on the MXU ----
    oh_in = (v_iota == in_lbl).astype(jnp.float32)    # (V, TB)
    inp_t = jnp.dot(in_tab_t, oh_in,
                    preferred_element_type=jnp.float32)          # (D, TB)

    acc = jnp.zeros((1, tile_b), jnp.float32)
    for c in range(num_ctx):                          # static unroll, C is small
        oh_c = (v_iota == ctx_lbl[c:c + 1, :]).astype(jnp.float32)   # (V, TB)
        ctx_t = jnp.dot(out_tab_t, oh_c,
                        preferred_element_type=jnp.float32)          # (D, TB)
        dot = jnp.sum(ctx_t * inp_t, axis=0, keepdims=True)          # (1, TB) sublane reduce
        signed = dot if c < num_pos else -dot         # sign is static per context slot
        acc = acc + _log_sigmoid(signed)

    # mask padded batch rows to 0 (harmless even if someone sums before slicing)
    lane = lax.broadcasted_iota(jnp.int32, (1, tile_b), 1)
    valid = (base + lane) < batch
    out_ref[...] = jnp.where(valid, -acc, 0.0)[None]  # (1, 1, TB)


def w2v_loss_pallas(in_embed, out_embed, input_labels, pos_labels, neg_labels,
                    *, tile_b=128):
    """loss[b] = -(sum_p logsig(<out[pos[b,p]], in[in_lbl[b]]>)
                 + sum_n logsig(<out[neg[b,n]], -in[in_lbl[b]]>))"""
    V, D = in_embed.shape
    B, P = pos_labels.shape
    _, N = neg_labels.shape
    C = P + N

    num_tiles = pl.cdiv(B, tile_b)
    b_pad = num_tiles * tile_b

    in_lbl = input_labels.astype(jnp.int32)
    ctx_lbl = jnp.concatenate([pos_labels, neg_labels], axis=1).astype(jnp.int32)  # (B, C)
    if b_pad != B:
        in_lbl = jnp.pad(in_lbl, (0, b_pad - B))
        ctx_lbl = jnp.pad(ctx_lbl, ((0, b_pad - B), (0, 0)))

    # batch-on-lanes layouts: labels (tiles, 1|C, tile_b); tables transposed to (D, V)
    in_lbl = in_lbl.reshape(num_tiles, 1, tile_b)
    ctx_lbl = ctx_lbl.reshape(num_tiles, tile_b, C).transpose(0, 2, 1)   # (tiles, C, TB)
    in_tab_t = in_embed.T.astype(jnp.float32)         # (D, V)
    out_tab_t = out_embed.T.astype(jnp.float32)       # (D, V)

    kernel = functools.partial(_w2v_kernel, num_pos=P, num_ctx=C,
                               vocab=V, batch=B, tile_b=tile_b)

    table_bytes = V * D * 4
    vmem_limit = int(min(
        100 * 2**20,
        4 * table_bytes                   # 2 tables x 2 pipeline buffers
        + 8 * V * tile_b * 4              # one-hot / matmul temporaries
        + 8 * 2**20))                     # headroom (label blocks, vregs, output)

    cost = pl.CostEstimate(
        flops=2 * (C + 1) * D * V * b_pad + 4 * C * D * b_pad,
        transcendentals=2 * C * b_pad,
        bytes_accessed=2 * table_bytes + (C + 2) * b_pad * 4)

    out = pl.pallas_call(
        kernel,
        grid=(num_tiles,),
        in_specs=[
            pl.BlockSpec((1, 1, tile_b), lambda i: (i, 0, 0)),   # center labels
            pl.BlockSpec((1, C, tile_b), lambda i: (i, 0, 0)),   # context labels
            # Full tables, constant block index -> DMA'd once, stay VMEM-resident.
            pl.BlockSpec((D, V), lambda i: (0, 0)),
            pl.BlockSpec((D, V), lambda i: (0, 0)),
        ],
        out_specs=pl.BlockSpec((1, 1, tile_b), lambda i: (i, 0, 0)),
        out_shape=jax.ShapeDtypeStruct((num_tiles, 1, tile_b), jnp.float32),
        compiler_params=pltpu.CompilerParams(
            dimension_semantics=("parallel",),        # batch tiles are independent
            vmem_limit_bytes=vmem_limit),
        cost_estimate=cost,
    )(in_lbl, ctx_lbl, in_tab_t, out_tab_t)

    return out.reshape(b_pad)[:B]                     # (B,) — matches PyTorch .squeeze()


class EmbeddingModelPallas:
    """JAX/Pallas port of the PyTorch EmbeddingModel (skip-gram + negative sampling)."""

    def __init__(self, vocab_size, embed_size, key):
        self.vocab_size = vocab_size
        self.embed_size = embed_size
        initrange = 0.5 / embed_size
        k1, k2 = jax.random.split(key)
        self.in_embed = jax.random.uniform(
            k1, (vocab_size, embed_size), jnp.float32, -initrange, initrange)
        self.out_embed = jax.random.uniform(
            k2, (vocab_size, embed_size), jnp.float32, -initrange, initrange)

    def forward(self, input_labels, pos_labels, neg_labels):
        return w2v_loss_pallas(self.in_embed, self.out_embed,
                               input_labels, pos_labels, neg_labels)

    def input_embeddings(self):
        return jax.device_get(self.in_embed)


def reference_forward(model, input_labels, pos_labels, neg_labels):
    inp = jnp.take(model.in_embed, input_labels, axis=0)
    pos = jnp.take(model.out_embed, pos_labels, axis=0)
    neg = jnp.take(model.out_embed, neg_labels, axis=0)
    hi = jax.lax.Precision.HIGHEST
    pos_dot = jnp.einsum('bpd,bd->bp', pos, inp, precision=hi)
    neg_dot = jnp.einsum('bnd,bd->bn', neg, -inp, precision=hi)
    log_pos = jax.nn.log_sigmoid(pos_dot).sum(1)
    log_neg = jax.nn.log_sigmoid(neg_dot).sum(1)
    return -(log_pos + log_neg)


if __name__ == "__main__":
    VOCAB, EMBED = 64, 32
    B, P, N = 64, 6, 10          # C = P + N = 16 context rows per center word

    key = jax.random.PRNGKey(0)
    km, ki, kp, kn = jax.random.split(key, 4)

    model = EmbeddingModelPallas(VOCAB, EMBED, km)

    input_labels = jax.random.randint(ki, (B,), 0, VOCAB, dtype=jnp.int32)
    pos_labels = jax.random.randint(kp, (B, P), 0, VOCAB, dtype=jnp.int32)
    neg_labels = jax.random.randint(kn, (B, N), 0, VOCAB, dtype=jnp.int32)

    loss = model.forward(input_labels, pos_labels, neg_labels)
    jax.block_until_ready(loss)

    ref = reference_forward(model, input_labels, pos_labels, neg_labels)
    assert loss.shape == (B,), loss.shape
    assert jnp.allclose(loss, ref, atol=2e-4, rtol=1e-5), float(jnp.max(jnp.abs(loss - ref)))

    print("KERNEL_OK")
</pallas_src>

<mosaic_0001>
module attributes {stable_mosaic.version = 11 : i64} {
  func.func @_w2v_kernel(%arg0: i32, %arg1: memref<1x1x128xi32, #tpu.memory_space<vmem>>, %arg2: memref<1x16x128xi32, #tpu.memory_space<vmem>>, %arg3: memref<32x64xf32, #tpu.memory_space<vmem>>, %arg4: memref<32x64xf32, #tpu.memory_space<vmem>>, %arg5: memref<1x1x128xf32, #tpu.memory_space<vmem>>) attributes {dimension_semantics = [#tpu.dimension_semantics<parallel>], iteration_bounds = array<i64: 1>, scalar_prefetch = 0 : i64, scratch_operands = 0 : i64, tpu.core_type = #tpu.core_type<tc>, window_params = [{transform_indices = @transform_0, window_bounds = array<i64: 1, 1, 128>}, {transform_indices = @transform_1, window_bounds = array<i64: 1, 16, 128>}, {pipeline_mode = #tpu.pipeline_mode<synchronous>, transform_indices = @transform_2, window_bounds = array<i64: 32, 64>}, {pipeline_mode = #tpu.pipeline_mode<synchronous>, transform_indices = @transform_3, window_bounds = array<i64: 32, 64>}, {transform_indices = @transform_4, window_bounds = array<i64: 1, 1, 128>}]} {
    %c128_i32 = arith.constant 128 : i32
    %0 = arith.muli %arg0, %c128_i32 : i32
    %c0 = arith.constant 0 : index
    %c0_0 = arith.constant 0 : index
    %1 = vector.load %arg3[%c0, %c0_0] : memref<32x64xf32, #tpu.memory_space<vmem>>, vector<32x64xf32>
    %c0_1 = arith.constant 0 : index
    %c0_2 = arith.constant 0 : index
    %2 = vector.load %arg4[%c0_1, %c0_2] : memref<32x64xf32, #tpu.memory_space<vmem>>, vector<32x64xf32>
    %c0_3 = arith.constant 0 : index
    %c0_4 = arith.constant 0 : index
    %c0_5 = arith.constant 0 : index
    %3 = vector.load %arg1[%c0_3, %c0_4, %c0_5] : memref<1x1x128xi32, #tpu.memory_space<vmem>>, vector<1x1x128xi32>
    %4 = vector.shape_cast %3 : vector<1x1x128xi32> to vector<1x128xi32>
    %c0_6 = arith.constant 0 : index
    %c0_7 = arith.constant 0 : index
    %c0_8 = arith.constant 0 : index
    %5 = vector.load %arg2[%c0_6, %c0_7, %c0_8] : memref<1x16x128xi32, #tpu.memory_space<vmem>>, vector<1x16x128xi32>
    %6 = vector.shape_cast %5 : vector<1x16x128xi32> to vector<16x128xi32>
    %7 = tpu.iota {dimensions = array<i32: 0>} : vector<64x128xi32>
    %8 = vector.broadcast %4 : vector<1x128xi32> to vector<64x128xi32>
    %9 = arith.cmpi eq, %7, %8 : vector<64x128xi32>
    %10 = arith.extui %9 : vector<64x128xi1> to vector<64x128xi32>
    %11 = arith.sitofp %10 : vector<64x128xi32> to vector<64x128xf32>
    %cst = arith.constant dense<0.000000e+00> : vector<32x128xf32>
    %12 = tpu.matmul %1, %11, %cst {dimension_numbers = #tpu.dot_dimension_numbers<[1], [0], [0], [1], [0, 0, 1, 1], [], []>} : vector<32x64xf32>, vector<64x128xf32>, vector<32x128xf32> -> vector<32x128xf32>
    %cst_9 = arith.constant 0.000000e+00 : f32
    %13 = vector.broadcast %cst_9 : f32 to vector<1x128xf32>
    %14 = vector.extract_strided_slice %6 {offsets = [0, 0], sizes = [1, 128], strides = [1, 1]} : vector<16x128xi32> to vector<1x128xi32>
    %15 = vector.broadcast %14 : vector<1x128xi32> to vector<64x128xi32>
    %16 = arith.cmpi eq, %7, %15 : vector<64x128xi32>
    %17 = arith.extui %16 : vector<64x128xi1> to vector<64x128xi32>
    %18 = arith.sitofp %17 : vector<64x128xi32> to vector<64x128xf32>
    %cst_10 = arith.constant dense<0.000000e+00> : vector<32x128xf32>
    %19 = tpu.matmul %2, %18, %cst_10 {dimension_numbers = #tpu.dot_dimension_numbers<[1], [0], [0], [1], [0, 0, 1, 1], [], []>} : vector<32x64xf32>, vector<64x128xf32>, vector<32x128xf32> -> vector<32x128xf32>
    %20 = arith.mulf %19, %12 : vector<32x128xf32>
    %cst_11 = arith.constant dense<0.000000e+00> : vector<128xf32>
    %21 = vector.multi_reduction <add>, %20, %cst_11 [0] : vector<32x128xf32> to vector<128xf32>
    %22 = vector.shape_cast %21 : vector<128xf32> to vector<1x128xf32>
    %cst_12 = arith.constant 0.000000e+00 : f32
    %23 = vector.broadcast %cst_12 : f32 to vector<1x128xf32>
    %24 = arith.subf %23, %22 : vector<1x128xf32>
    %cst_13 = arith.constant 0.000000e+00 : f32
    %25 = vector.broadcast %cst_13 : f32 to vector<1x128xf32>
    %26 = arith.maximumf %24, %25 : vector<1x128xf32>
    %27 = math.absf %22 : vector<1x128xf32>
    %cst_14 = arith.constant 0.000000e+00 : f32
    %28 = vector.broadcast %cst_14 : f32 to vector<1x128xf32>
    %29 = arith.subf %28, %27 : vector<1x128xf32>
    %30 = math.exp %29 : vector<1x128xf32>
    %31 = math.log1p %30 : vector<1x128xf32>
    %32 = arith.addf %26, %31 : vector<1x128xf32>
    %cst_15 = arith.constant 0.000000e+00 : f32
    %33 = vector.broadcast %cst_15 : f32 to vector<1x128xf32>
    %34 = arith.subf %33, %32 : vector<1x128xf32>
    %35 = arith.addf %13, %34 : vector<1x128xf32>
    %36 = vector.extract_strided_slice %6 {offsets = [1, 0], sizes = [1, 128], strides = [1, 1]} : vector<16x128xi32> to vector<1x128xi32>
    %37 = vector.broadcast %36 : vector<1x128xi32> to vector<64x128xi32>
    %38 = arith.cmpi eq, %7, %37 : vector<64x128xi32>
    %39 = arith.extui %38 : vector<64x128xi1> to vector<64x128xi32>
    %40 = arith.sitofp %39 : vector<64x128xi32> to vector<64x128xf32>
    %cst_16 = arith.constant dense<0.000000e+00> : vector<32x128xf32>
    %41 = tpu.matmul %2, %40, %cst_16 {dimension_numbers = #tpu.dot_dimension_numbers<[1], [0], [0], [1], [0, 0, 1, 1], [], []>} : vector<32x64xf32>, vector<64x128xf32>, vector<32x128xf32> -> vector<32x128xf32>
    %42 = arith.mulf %41, %12 : vector<32x128xf32>
    %cst_17 = arith.constant dense<0.000000e+00> : vector<128xf32>
    %43 = vector.multi_reduction <add>, %42, %cst_17 [0] : vector<32x128xf32> to vector<128xf32>
    %44 = vector.shape_cast %43 : vector<128xf32> to vector<1x128xf32>
    %cst_18 = arith.constant 0.000000e+00 : f32
    %45 = vector.broadcast %cst_18 : f32 to vector<1x128xf32>
    %46 = arith.subf %45, %44 : vector<1x128xf32>
    %cst_19 = arith.constant 0.000000e+00 : f32
    %47 = vector.broadcast %cst_19 : f32 to vector<1x128xf32>
    %48 = arith.maximumf %46, %47 : vector<1x128xf32>
    %49 = math.absf %44 : vector<1x128xf32>
    %cst_20 = arith.constant 0.000000e+00 : f32
    %50 = vector.broadcast %cst_20 : f32 to vector<1x128xf32>
    %51 = arith.subf %50, %49 : vector<1x128xf32>
    %52 = math.exp %51 : vector<1x128xf32>
    %53 = math.log1p %52 : vector<1x128xf32>
    %54 = arith.addf %48, %53 : vector<1x128xf32>
    %cst_21 = arith.constant 0.000000e+00 : f32
    %55 = vector.broadcast %cst_21 : f32 to vector<1x128xf32>
    %56 = arith.subf %55, %54 : vector<1x128xf32>
    %57 = arith.addf %35, %56 : vector<1x128xf32>
    %58 = vector.extract_strided_slice %6 {offsets = [2, 0], sizes = [1, 128], strides = [1, 1]} : vector<16x128xi32> to vector<1x128xi32>
    %59 = vector.broadcast %58 : vector<1x128xi32> to vector<64x128xi32>
    %60 = arith.cmpi eq, %7, %59 : vector<64x128xi32>
    %61 = arith.extui %60 : vector<64x128xi1> to vector<64x128xi32>
    %62 = arith.sitofp %61 : vector<64x128xi32> to vector<64x128xf32>
    %cst_22 = arith.constant dense<0.000000e+00> : vector<32x128xf32>
    %63 = tpu.matmul %2, %62, %cst_22 {dimension_numbers = #tpu.dot_dimension_numbers<[1], [0], [0], [1], [0, 0, 1, 1], [], []>} : vector<32x64xf32>, vector<64x128xf32>, vector<32x128xf32> -> vector<32x128xf32>
    %64 = arith.mulf %63, %12 : vector<32x128xf32>
    %cst_23 = arith.constant dense<0.000000e+00> : vector<128xf32>
    %65 = vector.multi_reduction <add>, %64, %cst_23 [0] : vector<32x128xf32> to vector<128xf32>
    %66 = vector.shape_cast %65 : vector<128xf32> to vector<1x128xf32>
    %cst_24 = arith.constant 0.000000e+00 : f32
    %67 = vector.broadcast %cst_24 : f32 to vector<1x128xf32>
    %68 = arith.subf %67, %66 : vector<1x128xf32>
    %cst_25 = arith.constant 0.000000e+00 : f32
    %69 = vector.broadcast %cst_25 : f32 to vector<1x128xf32>
    %70 = arith.maximumf %68, %69 : vector<1x128xf32>
    %71 = math.absf %66 : vector<1x128xf32>
    %cst_26 = arith.constant 0.000000e+00 : f32
    %72 = vector.broadcast %cst_26 : f32 to vector<1x128xf32>
    %73 = arith.subf %72, %71 : vector<1x128xf32>
    %74 = math.exp %73 : vector<1x128xf32>
    %75 = math.log1p %74 : vector<1x128xf32>
    %76 = arith.addf %70, %75 : vector<1x128xf32>
    %cst_27 = arith.constant 0.000000e+00 : f32
    %77 = vector.broadcast %cst_27 : f32 to vector<1x128xf32>
    %78 = arith.subf %77, %76 : vector<1x128xf32>
    %79 = arith.addf %57, %78 : vector<1x128xf32>
    %80 = vector.extract_strided_slice %6 {offsets = [3, 0], sizes = [1, 128], strides = [1, 1]} : vector<16x128xi32> to vector<1x128xi32>
    %81 = vector.broadcast %80 : vector<1x128xi32> to vector<64x128xi32>
    %82 = arith.cmpi eq, %7, %81 : vector<64x128xi32>
    %83 = arith.extui %82 : vector<64x128xi1> to vector<64x128xi32>
    %84 = arith.sitofp %83 : vector<64x128xi32> to vector<64x128xf32>
    %cst_28 = arith.constant dense<0.000000e+00> : vector<32x128xf32>
    %85 = tpu.matmul %2, %84, %cst_28 {dimension_numbers = #tpu.dot_dimension_numbers<[1], [0], [0], [1], [0, 0, 1, 1], [], []>} : vector<32x64xf32>, vector<64x128xf32>, vector<32x128xf32> -> vector<32x128xf32>
    %86 = arith.mulf %85, %12 : vector<32x128xf32>
    %cst_29 = arith.constant dense<0.000000e+00> : vector<128xf32>
    %87 = vector.multi_reduction <add>, %86, %cst_29 [0] : vector<32x128xf32> to vector<128xf32>
    %88 = vector.shape_cast %87 : vector<128xf32> to vector<1x128xf32>
    %cst_30 = arith.constant 0.000000e+00 : f32
    %89 = vector.broadcast %cst_30 : f32 to vector<1x128xf32>
    %90 = arith.subf %89, %88 : vector<1x128xf32>
    %cst_31 = arith.constant 0.000000e+00 : f32
    %91 = vector.broadcast %cst_31 : f32 to vector<1x128xf32>
    %92 = arith.maximumf %90, %91 : vector<1x128xf32>
    %93 = math.absf %88 : vector<1x128xf32>
    %cst_32 = arith.constant 0.000000e+00 : f32
    %94 = vector.broadcast %cst_32 : f32 to vector<1x128xf32>
    %95 = arith.subf %94, %93 : vector<1x128xf32>
    %96 = math.exp %95 : vector<1x128xf32>
    %97 = math.log1p %96 : vector<1x128xf32>
    %98 = arith.addf %92, %97 : vector<1x128xf32>
    %cst_33 = arith.constant 0.000000e+00 : f32
    %99 = vector.broadcast %cst_33 : f32 to vector<1x128xf32>
    %100 = arith.subf %99, %98 : vector<1x128xf32>
    %101 = arith.addf %79, %100 : vector<1x128xf32>
    %102 = vector.extract_strided_slice %6 {offsets = [4, 0], sizes = [1, 128], strides = [1, 1]} : vector<16x128xi32> to vector<1x128xi32>
    %103 = vector.broadcast %102 : vector<1x128xi32> to vector<64x128xi32>
    %104 = arith.cmpi eq, %7, %103 : vector<64x128xi32>
    %105 = arith.extui %104 : vector<64x128xi1> to vector<64x128xi32>
    %106 = arith.sitofp %105 : vector<64x128xi32> to vector<64x128xf32>
    %cst_34 = arith.constant dense<0.000000e+00> : vector<32x128xf32>
    %107 = tpu.matmul %2, %106, %cst_34 {dimension_numbers = #tpu.dot_dimension_numbers<[1], [0], [0], [1], [0, 0, 1, 1], [], []>} : vector<32x64xf32>, vector<64x128xf32>, vector<32x128xf32> -> vector<32x128xf32>
    %108 = arith.mulf %107, %12 : vector<32x128xf32>
    %cst_35 = arith.constant dense<0.000000e+00> : vector<128xf32>
    %109 = vector.multi_reduction <add>, %108, %cst_35 [0] : vector<32x128xf32> to vector<128xf32>
    %110 = vector.shape_cast %109 : vector<128xf32> to vector<1x128xf32>
    %cst_36 = arith.constant 0.000000e+00 : f32
    %111 = vector.broadcast %cst_36 : f32 to vector<1x128xf32>
    %112 = arith.subf %111, %110 : vector<1x128xf32>
    %cst_37 = arith.constant 0.000000e+00 : f32
    %113 = vector.broadcast %cst_37 : f32 to vector<1x128xf32>
    %114 = arith.maximumf %112, %113 : vector<1x128xf32>
    %115 = math.absf %110 : vector<1x128xf32>
    %cst_38 = arith.constant 0.000000e+00 : f32
    %116 = vector.broadcast %cst_38 : f32 to vector<1x128xf32>
    %117 = arith.subf %116, %115 : vector<1x128xf32>
    %118 = math.exp %117 : vector<1x128xf32>
    %119 = math.log1p %118 : vector<1x128xf32>
    %120 = arith.addf %114, %119 : vector<1x128xf32>
    %cst_39 = arith.constant 0.000000e+00 : f32
    %121 = vector.broadcast %cst_39 : f32 to vector<1x128xf32>
    %122 = arith.subf %121, %120 : vector<1x128xf32>
    %123 = arith.addf %101, %122 : vector<1x128xf32>
    %124 = vector.extract_strided_slice %6 {offsets = [5, 0], sizes = [1, 128], strides = [1, 1]} : vector<16x128xi32> to vector<1x128xi32>
    %125 = vector.broadcast %124 : vector<1x128xi32> to vector<64x128xi32>
    %126 = arith.cmpi eq, %7, %125 : vector<64x128xi32>
    %127 = arith.extui %126 : vector<64x128xi1> to vector<64x128xi32>
    %128 = arith.sitofp %127 : vector<64x128xi32> to vector<64x128xf32>
    %cst_40 = arith.constant dense<0.000000e+00> : vector<32x128xf32>
    %129 = tpu.matmul %2, %128, %cst_40 {dimension_numbers = #tpu.dot_dimension_numbers<[1], [0], [0], [1], [0, 0, 1, 1], [], []>} : vector<32x64xf32>, vector<64x128xf32>, vector<32x128xf32> -> vector<32x128xf32>
    %130 = arith.mulf %129, %12 : vector<32x128xf32>
    %cst_41 = arith.constant dense<0.000000e+00> : vector<128xf32>
    %131 = vector.multi_reduction <add>, %130, %cst_41 [0] : vector<32x128xf32> to vector<128xf32>
    %132 = vector.shape_cast %131 : vector<128xf32> to vector<1x128xf32>
    %cst_42 = arith.constant 0.000000e+00 : f32
    %133 = vector.broadcast %cst_42 : f32 to vector<1x128xf32>
    %134 = arith.subf %133, %132 : vector<1x128xf32>
    %cst_43 = arith.constant 0.000000e+00 : f32
    %135 = vector.broadcast %cst_43 : f32 to vector<1x128xf32>
    %136 = arith.maximumf %134, %135 : vector<1x128xf32>
    %137 = math.absf %132 : vector<1x128xf32>
    %cst_44 = arith.constant 0.000000e+00 : f32
    %138 = vector.broadcast %cst_44 : f32 to vector<1x128xf32>
    %139 = arith.subf %138, %137 : vector<1x128xf32>
    %140 = math.exp %139 : vector<1x128xf32>
    %141 = math.log1p %140 : vector<1x128xf32>
    %142 = arith.addf %136, %141 : vector<1x128xf32>
    %cst_45 = arith.constant 0.000000e+00 : f32
    %143 = vector.broadcast %cst_45 : f32 to vector<1x128xf32>
    %144 = arith.subf %143, %142 : vector<1x128xf32>
    %145 = arith.addf %123, %144 : vector<1x128xf32>
    %146 = vector.extract_strided_slice %6 {offsets = [6, 0], sizes = [1, 128], strides = [1, 1]} : vector<16x128xi32> to vector<1x128xi32>
    %147 = vector.broadcast %146 : vector<1x128xi32> to vector<64x128xi32>
    %148 = arith.cmpi eq, %7, %147 : vector<64x128xi32>
    %149 = arith.extui %148 : vector<64x128xi1> to vector<64x128xi32>
    %150 = arith.sitofp %149 : vector<64x128xi32> to vector<64x128xf32>
    %cst_46 = arith.constant dense<0.000000e+00> : vector<32x128xf32>
    %151 = tpu.matmul %2, %150, %cst_46 {dimension_numbers = #tpu.dot_dimension_numbers<[1], [0], [0], [1], [0, 0, 1, 1], [], []>} : vector<32x64xf32>, vector<64x128xf32>, vector<32x128xf32> -> vector<32x128xf32>
    %152 = arith.mulf %151, %12 : vector<32x128xf32>
    %cst_47 = arith.constant dense<0.000000e+00> : vector<128xf32>
    %153 = vector.multi_reduction <add>, %152, %cst_47 [0] : vector<32x128xf32> to vector<128xf32>
    %154 = vector.shape_cast %153 : vector<128xf32> to vector<1x128xf32>
    %cst_48 = arith.constant 0.000000e+00 : f32
    %155 = vector.broadcast %cst_48 : f32 to vector<1x128xf32>
    %156 = arith.subf %155, %154 : vector<1x128xf32>
    %cst_49 = arith.constant 0.000000e+00 : f32
    %157 = vector.broadcast %cst_49 : f32 to vector<1x128xf32>
    %158 = arith.subf %157, %156 : vector<1x128xf32>
    %cst_50 = arith.constant 0.000000e+00 : f32
    %159 = vector.broadcast %cst_50 : f32 to vector<1x128xf32>
    %160 = arith.maximumf %158, %159 : vector<1x128xf32>
    %161 = math.absf %156 : vector<1x128xf32>
    %cst_51 = arith.constant 0.000000e+00 : f32
    %162 = vector.broadcast %cst_51 : f32 to vector<1x128xf32>
    %163 = arith.subf %162, %161 : vector<1x128xf32>
    %164 = math.exp %163 : vector<1x128xf32>
    %165 = math.log1p %164 : vector<1x128xf32>
    %166 = arith.addf %160, %165 : vector<1x128xf32>
    %cst_52 = arith.constant 0.000000e+00 : f32
    %167 = vector.broadcast %cst_52 : f32 to vector<1x128xf32>
    %168 = arith.subf %167, %166 : vector<1x128xf32>
    %169 = arith.addf %145, %168 : vector<1x128xf32>
    %170 = vector.extract_strided_slice %6 {offsets = [7, 0], sizes = [1, 128], strides = [1, 1]} : vector<16x128xi32> to vector<1x128xi32>
    %171 = vector.broadcast %170 : vector<1x128xi32> to vector<64x128xi32>
    %172 = arith.cmpi eq, %7, %171 : vector<64x128xi32>
    %173 = arith.extui %172 : vector<64x128xi1> to vector<64x128xi32>
    %174 = arith.sitofp %173 : vector<64x128xi32> to vector<64x128xf32>
    %cst_53 = arith.constant dense<0.000000e+00> : vector<32x128xf32>
    %175 = tpu.matmul %2, %174, %cst_53 {dimension_numbers = #tpu.dot_dimension_numbers<[1], [0], [0], [1], [0, 0, 1, 1], [], []>} : vector<32x64xf32>, vector<64x128xf32>, vector<32x128xf32> -> vector<32x128xf32>
    %176 = arith.mulf %175, %12 : vector<32x128xf32>
    %cst_54 = arith.constant dense<0.000000e+00> : vector<128xf32>
    %177 = vector.multi_reduction <add>, %176, %cst_54 [0] : vector<32x128xf32> to vector<128xf32>
    %178 = vector.shape_cast %177 : vector<128xf32> to vector<1x128xf32>
    %cst_55 = arith.constant 0.000000e+00 : f32
    %179 = vector.broadcast %cst_55 : f32 to vector<1x128xf32>
    %180 = arith.subf %179, %178 : vector<1x128xf32>
    %cst_56 = arith.constant 0.000000e+00 : f32
    %181 = vector.broadcast %cst_56 : f32 to vector<1x128xf32>
    %182 = arith.subf %181, %180 : vector<1x128xf32>
    %cst_57 = arith.constant 0.000000e+00 : f32
    %183 = vector.broadcast %cst_57 : f32 to vector<1x128xf32>
    %184 = arith.maximumf %182, %183 : vector<1x128xf32>
    %185 = math.absf %180 : vector<1x128xf32>
    %cst_58 = arith.constant 0.000000e+00 : f32
    %186 = vector.broadcast %cst_58 : f32 to vector<1x128xf32>
    %187 = arith.subf %186, %185 : vector<1x128xf32>
    %188 = math.exp %187 : vector<1x128xf32>
    %189 = math.log1p %188 : vector<1x128xf32>
    %190 = arith.addf %184, %189 : vector<1x128xf32>
    %cst_59 = arith.constant 0.000000e+00 : f32
    %191 = vector.broadcast %cst_59 : f32 to vector<1x128xf32>
    %192 = arith.subf %191, %190 : vector<1x128xf32>
    %193 = arith.addf %169, %192 : vector<1x128xf32>
    %194 = vector.extract_strided_slice %6 {offsets = [8, 0], sizes = [1, 128], strides = [1, 1]} : vector<16x128xi32> to vector<1x128xi32>
    %195 = vector.broadcast %194 : vector<1x128xi32> to vector<64x128xi32>
    %196 = arith.cmpi eq, %7, %195 : vector<64x128xi32>
    %197 = arith.extui %196 : vector<64x128xi1> to vector<64x128xi32>
    %198 = arith.sitofp %197 : vector<64x128xi32> to vector<64x128xf32>
    %cst_60 = arith.constant dense<0.000000e+00> : vector<32x128xf32>
    %199 = tpu.matmul %2, %198, %cst_60 {dimension_numbers = #tpu.dot_dimension_numbers<[1], [0], [0], [1], [0, 0, 1, 1], [], []>} : vector<32x64xf32>, vector<64x128xf32>, vector<32x128xf32> -> vector<32x128xf32>
    %200 = arith.mulf %199, %12 : vector<32x128xf32>
    %cst_61 = arith.constant dense<0.000000e+00> : vector<128xf32>
    %201 = vector.multi_reduction <add>, %200, %cst_61 [0] : vector<32x128xf32> to vector<128xf32>
    %202 = vector.shape_cast %201 : vector<128xf32> to vector<1x128xf32>
    %cst_62 = arith.constant 0.000000e+00 : f32
    %203 = vector.broadcast %cst_62 : f32 to vector<1x128xf32>
    %204 = arith.subf %203, %202 : vector<1x128xf32>
    %cst_63 = arith.constant 0.000000e+00 : f32
    %205 = vector.broadcast %cst_63 : f32 to vector<1x128xf32>
    %206 = arith.subf %205, %204 : vector<1x128xf32>
    %cst_64 = arith.constant 0.000000e+00 : f32
    %207 = vector.broadcast %cst_64 : f32 to vector<1x128xf32>
    %208 = arith.maximumf %206, %207 : vector<1x128xf32>
    %209 = math.absf %204 : vector<1x128xf32>
    %cst_65 = arith.constant 0.000000e+00 : f32
    %210 = vector.broadcast %cst_65 : f32 to vector<1x128xf32>
    %211 = arith.subf %210, %209 : vector<1x128xf32>
    %212 = math.exp %211 : vector<1x128xf32>
    %213 = math.log1p %212 : vector<1x128xf32>
    %214 = arith.addf %208, %213 : vector<1x128xf32>
    %cst_66 = arith.constant 0.000000e+00 : f32
    %215 = vector.broadcast %cst_66 : f32 to vector<1x128xf32>
    %216 = arith.subf %215, %214 : vector<1x128xf32>
    %217 = arith.addf %193, %216 : vector<1x128xf32>
    %218 = vector.extract_strided_slice %6 {offsets = [9, 0], sizes = [1, 128], strides = [1, 1]} : vector<16x128xi32> to vector<1x128xi32>
    %219 = vector.broadcast %218 : vector<1x128xi32> to vector<64x128xi32>
    %220 = arith.cmpi eq, %7, %219 : vector<64x128xi32>
    %221 = arith.extui %220 : vector<64x128xi1> to vector<64x128xi32>
    %222 = arith.sitofp %221 : vector<64x128xi32> to vector<64x128xf32>
    %cst_67 = arith.constant dense<0.000000e+00> : vector<32x128xf32>
    %223 = tpu.matmul %2, %222, %cst_67 {dimension_numbers = #tpu.dot_dimension_numbers<[1], [0], [0], [1], [0, 0, 1, 1], [], []>} : vector<32x64xf32>, vector<64x128xf32>, vector<32x128xf32> -> vector<32x128xf32>
    %224 = arith.mulf %223, %12 : vector<32x128xf32>
    %cst_68 = arith.constant dense<0.000000e+00> : vector<128xf32>
    %225 = vector.multi_reduction <add>, %224, %cst_68 [0] : vector<32x128xf32> to vector<128xf32>
    %226 = vector.shape_cast %225 : vector<128xf32> to vector<1x128xf32>
    %cst_69 = arith.constant 0.000000e+00 : f32
    %227 = vector.broadcast %cst_69 : f32 to vector<1x128xf32>
    %228 = arith.subf %227, %226 : vector<1x128xf32>
    %cst_70 = arith.constant 0.000000e+00 : f32
    %229 = vector.broadcast %cst_70 : f32 to vector<1x128xf32>
    %230 = arith.subf %229, %228 : vector<1x128xf32>
    %cst_71 = arith.constant 0.000000e+00 : f32
    %231 = vector.broadcast %cst_71 : f32 to vector<1x128xf32>
    %232 = arith.maximumf %230, %231 : vector<1x128xf32>
    %233 = math.absf %228 : vector<1x128xf32>
    %cst_72 = arith.constant 0.000000e+00 : f32
    %234 = vector.broadcast %cst_72 : f32 to vector<1x128xf32>
    %235 = arith.subf %234, %233 : vector<1x128xf32>
    %236 = math.exp %235 : vector<1x128xf32>
    %237 = math.log1p %236 : vector<1x128xf32>
    %238 = arith.addf %232, %237 : vector<1x128xf32>
    %cst_73 = arith.constant 0.000000e+00 : f32
    %239 = vector.broadcast %cst_73 : f32 to vector<1x128xf32>
    %240 = arith.subf %239, %238 : vector<1x128xf32>
    %241 = arith.addf %217, %240 : vector<1x128xf32>
    %242 = vector.extract_strided_slice %6 {offsets = [10, 0], sizes = [1, 128], strides = [1, 1]} : vector<16x128xi32> to vector<1x128xi32>
    %243 = vector.broadcast %242 : vector<1x128xi32> to vector<64x128xi32>
    %244 = arith.cmpi eq, %7, %243 : vector<64x128xi32>
    %245 = arith.extui %244 : vector<64x128xi1> to vector<64x128xi32>
    %246 = arith.sitofp %245 : vector<64x128xi32> to vector<64x128xf32>
    %cst_74 = arith.constant dense<0.000000e+00> : vector<32x128xf32>
    %247 = tpu.matmul %2, %246, %cst_74 {dimension_numbers = #tpu.dot_dimension_numbers<[1], [0], [0], [1], [0, 0, 1, 1], [], []>} : vector<32x64xf32>, vector<64x128xf32>, vector<32x128xf32> -> vector<32x128xf32>
    %248 = arith.mulf %247, %12 : vector<32x128xf32>
    %cst_75 = arith.constant dense<0.000000e+00> : vector<128xf32>
    %249 = vector.multi_reduction <add>, %248, %cst_75 [0] : vector<32x128xf32> to vector<128xf32>
    %250 = vector.shape_cast %249 : vector<128xf32> to vector<1x128xf32>
    %cst_76 = arith.constant 0.000000e+00 : f32
    %251 = vector.broadcast %cst_76 : f32 to vector<1x128xf32>
    %252 = arith.subf %251, %250 : vector<1x128xf32>
    %cst_77 = arith.constant 0.000000e+00 : f32
    %253 = vector.broadcast %cst_77 : f32 to vector<1x128xf32>
    %254 = arith.subf %253, %252 : vector<1x128xf32>
    %cst_78 = arith.constant 0.000000e+00 : f32
    %255 = vector.broadcast %cst_78 : f32 to vector<1x128xf32>
    %256 = arith.maximumf %254, %255 : vector<1x128xf32>
    %257 = math.absf %252 : vector<1x128xf32>
    %cst_79 = arith.constant 0.000000e+00 : f32
    %258 = vector.broadcast %cst_79 : f32 to vector<1x128xf32>
    %259 = arith.subf %258, %257 : vector<1x128xf32>
    %260 = math.exp %259 : vector<1x128xf32>
    %261 = math.log1p %260 : vector<1x128xf32>
    %262 = arith.addf %256, %261 : vector<1x128xf32>
    %cst_80 = arith.constant 0.000000e+00 : f32
    %263 = vector.broadcast %cst_80 : f32 to vector<1x128xf32>
    %264 = arith.subf %263, %262 : vector<1x128xf32>
    %265 = arith.addf %241, %264 : vector<1x128xf32>
    %266 = vector.extract_strided_slice %6 {offsets = [11, 0], sizes = [1, 128], strides = [1, 1]} : vector<16x128xi32> to vector<1x128xi32>
    %267 = vector.broadcast %266 : vector<1x128xi32> to vector<64x128xi32>
    %268 = arith.cmpi eq, %7, %267 : vector<64x128xi32>
    %269 = arith.extui %268 : vector<64x128xi1> to vector<64x128xi32>
    %270 = arith.sitofp %269 : vector<64x128xi32> to vector<64x128xf32>
    %cst_81 = arith.constant dense<0.000000e+00> : vector<32x128xf32>
    %271 = tpu.matmul %2, %270, %cst_81 {dimension_numbers = #tpu.dot_dimension_numbers<[1], [0], [0], [1], [0, 0, 1, 1], [], []>} : vector<32x64xf32>, vector<64x128xf32>, vector<32x128xf32> -> vector<32x128xf32>
    %272 = arith.mulf %271, %12 : vector<32x128xf32>
    %cst_82 = arith.constant dense<0.000000e+00> : vector<128xf32>
    %273 = vector.multi_reduction <add>, %272, %cst_82 [0] : vector<32x128xf32> to vector<128xf32>
    %274 = vector.shape_cast %273 : vector<128xf32> to vector<1x128xf32>
    %cst_83 = arith.constant 0.000000e+00 : f32
    %275 = vector.broadcast %cst_83 : f32 to vector<1x128xf32>
    %276 = arith.subf %275, %274 : vector<1x128xf32>
    %cst_84 = arith.constant 0.000000e+00 : f32
    %277 = vector.broadcast %cst_84 : f32 to vector<1x128xf32>
    %278 = arith.subf %277, %276 : vector<1x128xf32>
    %cst_85 = arith.constant 0.000000e+00 : f32
    %279 = vector.broadcast %cst_85 : f32 to vector<1x128xf32>
    %280 = arith.maximumf %278, %279 : vector<1x128xf32>
    %281 = math.absf %276 : vector<1x128xf32>
    %cst_86 = arith.constant 0.000000e+00 : f32
    %282 = vector.broadcast %cst_86 : f32 to vector<1x128xf32>
    %283 = arith.subf %282, %281 : vector<1x128xf32>
    %284 = math.exp %283 : vector<1x128xf32>
    %285 = math.log1p %284 : vector<1x128xf32>
    %286 = arith.addf %280, %285 : vector<1x128xf32>
    %cst_87 = arith.constant 0.000000e+00 : f32
    %287 = vector.broadcast %cst_87 : f32 to vector<1x128xf32>
    %288 = arith.subf %287, %286 : vector<1x128xf32>
    %289 = arith.addf %265, %288 : vector<1x128xf32>
    %290 = vector.extract_strided_slice %6 {offsets = [12, 0], sizes = [1, 128], strides = [1, 1]} : vector<16x128xi32> to vector<1x128xi32>
    %291 = vector.broadcast %290 : vector<1x128xi32> to vector<64x128xi32>
    %292 = arith.cmpi eq, %7, %291 : vector<64x128xi32>
    %293 = arith.extui %292 : vector<64x128xi1> to vector<64x128xi32>
    %294 = arith.sitofp %293 : vector<64x128xi32> to vector<64x128xf32>
    %cst_88 = arith.constant dense<0.000000e+00> : vector<32x128xf32>
    %295 = tpu.matmul %2, %294, %cst_88 {dimension_numbers = #tpu.dot_dimension_numbers<[1], [0], [0], [1], [0, 0, 1, 1], [], []>} : vector<32x64xf32>, vector<64x128xf32>, vector<32x128xf32> -> vector<32x128xf32>
    %296 = arith.mulf %295, %12 : vector<32x128xf32>
    %cst_89 = arith.constant dense<0.000000e+00> : vector<128xf32>
    %297 = vector.multi_reduction <add>, %296, %cst_89 [0] : vector<32x128xf32> to vector<128xf32>
    %298 = vector.shape_cast %297 : vector<128xf32> to vector<1x128xf32>
    %cst_90 = arith.constant 0.000000e+00 : f32
    %299 = vector.broadcast %cst_90 : f32 to vector<1x128xf32>
    %300 = arith.subf %299, %298 : vector<1x128xf32>
    %cst_91 = arith.constant 0.000000e+00 : f32
    %301 = vector.broadcast %cst_91 : f32 to vector<1x128xf32>
    %302 = arith.subf %301, %300 : vector<1x128xf32>
    %cst_92 = arith.constant 0.000000e+00 : f32
    %303 = vector.broadcast %cst_92 : f32 to vector<1x128xf32>
    %304 = arith.maximumf %302, %303 : vector<1x128xf32>
    %305 = math.absf %300 : vector<1x128xf32>
    %cst_93 = arith.constant 0.000000e+00 : f32
    %306 = vector.broadcast %cst_93 : f32 to vector<1x128xf32>
    %307 = arith.subf %306, %305 : vector<1x128xf32>
    %308 = math.exp %307 : vector<1x128xf32>
    %309 = math.log1p %308 : vector<1x128xf32>
    %310 = arith.addf %304, %309 : vector<1x128xf32>
    %cst_94 = arith.constant 0.000000e+00 : f32
    %311 = vector.broadcast %cst_94 : f32 to vector<1x128xf32>
    %312 = arith.subf %311, %310 : vector<1x128xf32>
    %313 = arith.addf %289, %312 : vector<1x128xf32>
    %314 = vector.extract_strided_slice %6 {offsets = [13, 0], sizes = [1, 128], strides = [1, 1]} : vector<16x128xi32> to vector<1x128xi32>
    %315 = vector.broadcast %314 : vector<1x128xi32> to vector<64x128xi32>
    %316 = arith.cmpi eq, %7, %315 : vector<64x128xi32>
    %317 = arith.extui %316 : vector<64x128xi1> to vector<64x128xi32>
    %318 = arith.sitofp %317 : vector<64x128xi32> to vector<64x128xf32>
    %cst_95 = arith.constant dense<0.000000e+00> : vector<32x128xf32>
    %319 = tpu.matmul %2, %318, %cst_95 {dimension_numbers = #tpu.dot_dimension_numbers<[1], [0], [0], [1], [0, 0, 1, 1], [], []>} : vector<32x64xf32>, vector<64x128xf32>, vector<32x128xf32> -> vector<32x128xf32>
    %320 = arith.mulf %319, %12 : vector<32x128xf32>
    %cst_96 = arith.constant dense<0.000000e+00> : vector<128xf32>
    %321 = vector.multi_reduction <add>, %320, %cst_96 [0] : vector<32x128xf32> to vector<128xf32>
    %322 = vector.shape_cast %321 : vector<128xf32> to vector<1x128xf32>
    %cst_97 = arith.constant 0.000000e+00 : f32
    %323 = vector.broadcast %cst_97 : f32 to vector<1x128xf32>
    %324 = arith.subf %323, %322 : vector<1x128xf32>
    %cst_98 = arith.constant 0.000000e+00 : f32
    %325 = vector.broadcast %cst_98 : f32 to vector<1x128xf32>
    %326 = arith.subf %325, %324 : vector<1x128xf32>
    %cst_99 = arith.constant 0.000000e+00 : f32
    %327 = vector.broadcast %cst_99 : f32 to vector<1x128xf32>
    %328 = arith.maximumf %326, %327 : vector<1x128xf32>
    %329 = math.absf %324 : vector<1x128xf32>
    %cst_100 = arith.constant 0.000000e+00 : f32
    %330 = vector.broadcast %cst_100 : f32 to vector<1x128xf32>
    %331 = arith.subf %330, %329 : vector<1x128xf32>
    %332 = math.exp %331 : vector<1x128xf32>
    %333 = math.log1p %332 : vector<1x128xf32>
    %334 = arith.addf %328, %333 : vector<1x128xf32>
    %cst_101 = arith.constant 0.000000e+00 : f32
    %335 = vector.broadcast %cst_101 : f32 to vector<1x128xf32>
    %336 = arith.subf %335, %334 : vector<1x128xf32>
    %337 = arith.addf %313, %336 : vector<1x128xf32>
    %338 = vector.extract_strided_slice %6 {offsets = [14, 0], sizes = [1, 128], strides = [1, 1]} : vector<16x128xi32> to vector<1x128xi32>
    %339 = vector.broadcast %338 : vector<1x128xi32> to vector<64x128xi32>
    %340 = arith.cmpi eq, %7, %339 : vector<64x128xi32>
    %341 = arith.extui %340 : vector<64x128xi1> to vector<64x128xi32>
    %342 = arith.sitofp %341 : vector<64x128xi32> to vector<64x128xf32>
    %cst_102 = arith.constant dense<0.000000e+00> : vector<32x128xf32>
    %343 = tpu.matmul %2, %342, %cst_102 {dimension_numbers = #tpu.dot_dimension_numbers<[1], [0], [0], [1], [0, 0, 1, 1], [], []>} : vector<32x64xf32>, vector<64x128xf32>, vector<32x128xf32> -> vector<32x128xf32>
    %344 = arith.mulf %343, %12 : vector<32x128xf32>
    %cst_103 = arith.constant dense<0.000000e+00> : vector<128xf32>
    %345 = vector.multi_reduction <add>, %344, %cst_103 [0] : vector<32x128xf32> to vector<128xf32>
    %346 = vector.shape_cast %345 : vector<128xf32> to vector<1x128xf32>
    %cst_104 = arith.constant 0.000000e+00 : f32
    %347 = vector.broadcast %cst_104 : f32 to vector<1x128xf32>
    %348 = arith.subf %347, %346 : vector<1x128xf32>
    %cst_105 = arith.constant 0.000000e+00 : f32
    %349 = vector.broadcast %cst_105 : f32 to vector<1x128xf32>
    %350 = arith.subf %349, %348 : vector<1x128xf32>
    %cst_106 = arith.constant 0.000000e+00 : f32
    %351 = vector.broadcast %cst_106 : f32 to vector<1x128xf32>
    %352 = arith.maximumf %350, %351 : vector<1x128xf32>
    %353 = math.absf %348 : vector<1x128xf32>
    %cst_107 = arith.constant 0.000000e+00 : f32
    %354 = vector.broadcast %cst_107 : f32 to vector<1x128xf32>
    %355 = arith.subf %354, %353 : vector<1x128xf32>
    %356 = math.exp %355 : vector<1x128xf32>
    %357 = math.log1p %356 : vector<1x128xf32>
    %358 = arith.addf %352, %357 : vector<1x128xf32>
    %cst_108 = arith.constant 0.000000e+00 : f32
    %359 = vector.broadcast %cst_108 : f32 to vector<1x128xf32>
    %360 = arith.subf %359, %358 : vector<1x128xf32>
    %361 = arith.addf %337, %360 : vector<1x128xf32>
    %362 = vector.extract_strided_slice %6 {offsets = [15, 0], sizes = [1, 128], strides = [1, 1]} : vector<16x128xi32> to vector<1x128xi32>
    %363 = vector.broadcast %362 : vector<1x128xi32> to vector<64x128xi32>
    %364 = arith.cmpi eq, %7, %363 : vector<64x128xi32>
    %365 = arith.extui %364 : vector<64x128xi1> to vector<64x128xi32>
    %366 = arith.sitofp %365 : vector<64x128xi32> to vector<64x128xf32>
    %cst_109 = arith.constant dense<0.000000e+00> : vector<32x128xf32>
    %367 = tpu.matmul %2, %366, %cst_109 {dimension_numbers = #tpu.dot_dimension_numbers<[1], [0], [0], [1], [0, 0, 1, 1], [], []>} : vector<32x64xf32>, vector<64x128xf32>, vector<32x128xf32> -> vector<32x128xf32>
    %368 = arith.mulf %367, %12 : vector<32x128xf32>
    %cst_110 = arith.constant dense<0.000000e+00> : vector<128xf32>
    %369 = vector.multi_reduction <add>, %368, %cst_110 [0] : vector<32x128xf32> to vector<128xf32>
    %370 = vector.shape_cast %369 : vector<128xf32> to vector<1x128xf32>
    %cst_111 = arith.constant 0.000000e+00 : f32
    %371 = vector.broadcast %cst_111 : f32 to vector<1x128xf32>
    %372 = arith.subf %371, %370 : vector<1x128xf32>
    %cst_112 = arith.constant 0.000000e+00 : f32
    %373 = vector.broadcast %cst_112 : f32 to vector<1x128xf32>
    %374 = arith.subf %373, %372 : vector<1x128xf32>
    %cst_113 = arith.constant 0.000000e+00 : f32
    %375 = vector.broadcast %cst_113 : f32 to vector<1x128xf32>
    %376 = arith.maximumf %374, %375 : vector<1x128xf32>
    %377 = math.absf %372 : vector<1x128xf32>
    %cst_114 = arith.constant 0.000000e+00 : f32
    %378 = vector.broadcast %cst_114 : f32 to vector<1x128xf32>
    %379 = arith.subf %378, %377 : vector<1x128xf32>
    %380 = math.exp %379 : vector<1x128xf32>
    %381 = math.log1p %380 : vector<1x128xf32>
    %382 = arith.addf %376, %381 : vector<1x128xf32>
    %cst_115 = arith.constant 0.000000e+00 : f32
    %383 = vector.broadcast %cst_115 : f32 to vector<1x128xf32>
    %384 = arith.subf %383, %382 : vector<1x128xf32>
    %385 = arith.addf %361, %384 : vector<1x128xf32>
    %386 = tpu.iota {dimensions = array<i32: 1>} : vector<1x128xi32>
    %387 = vector.broadcast %0 : i32 to vector<1x128xi32>
    %388 = arith.addi %387, %386 : vector<1x128xi32>
    %c64_i32 = arith.constant 64 : i32
    %389 = vector.broadcast %c64_i32 : i32 to vector<1x128xi32>
    %390 = arith.cmpi slt, %388, %389 : vector<1x128xi32>
    %cst_116 = arith.constant 0.000000e+00 : f32
    %391 = vector.broadcast %cst_116 : f32 to vector<1x128xf32>
    %392 = arith.subf %391, %385 : vector<1x128xf32>
    %cst_117 = arith.constant 0.000000e+00 : f32
    %393 = vector.broadcast %cst_117 : f32 to vector<1x128xf32>
    %394 = arith.select %390, %392, %393 : vector<1x128xi1>, vector<1x128xf32>
    %395 = vector.shape_cast %394 : vector<1x128xf32> to vector<1x1x128xf32>
    %c0_118 = arith.constant 0 : index
    %c0_119 = arith.constant 0 : index
    %c0_120 = arith.constant 0 : index
    %396 = vector.load %arg5[%c0_118, %c0_119, %c0_120] : memref<1x1x128xf32, #tpu.memory_space<vmem>>, vector<1x1x128xf32>
    tpu.vector_store %arg5[%c0_118, %c0_119, %c0_120], %395 {strides = array<i32>} : memref<1x1x128xf32, #tpu.memory_space<vmem>>, vector<1x1x128xf32>,
    return
  }
  func.func @transform_0(%arg0: i32) -> (i32, i32, i32) {
    %c0_i32 = arith.constant 0 : i32
    %c0_i32_0 = arith.constant 0 : i32
    %c0_i32_1 = arith.constant 0 : i32
    return %arg0, %c0_i32, %c0_i32_0 : i32, i32, i32
  }
  func.func @transform_1(%arg0: i32) -> (i32, i32, i32) {
    %c0_i32 = arith.constant 0 : i32
    %c0_i32_0 = arith.constant 0 : i32
    %c0_i32_1 = arith.constant 0 : i32
    return %arg0, %c0_i32, %c0_i32_0 : i32, i32, i32
  }
  func.func @transform_2(%arg0: i32) -> (i32, i32) {
    %c0_i32 = arith.constant 0 : i32
    %c0_i32_0 = arith.constant 0 : i32
    %c0_i32_1 = arith.constant 0 : i32
    return %c0_i32, %c0_i32_0 : i32, i32
  }
  func.func @transform_3(%arg0: i32) -> (i32, i32) {
    %c0_i32 = arith.constant 0 : i32
    %c0_i32_0 = arith.constant 0 : i32
    %c0_i32_1 = arith.constant 0 : i32
    return %c0_i32, %c0_i32_0 : i32, i32
  }
  func.func @transform_4(%arg0: i32) -> (i32, i32, i32) {
    %c0_i32 = arith.constant 0 : i32
    %c0_i32_0 = arith.constant 0 : i32
    %c0_i32_1 = arith.constant 0 : i32
    return %arg0, %c0_i32, %c0_i32_0 : i32, i32, i32
  }
}

</mosaic_0001>

<bundles_post_ra>
// kernel: tpu_custom_call.1
= control target key start
LH: loop header
LB: loop body
LE: loop exit
PB: predicated region body
PF: predicated region fallthrough
CT: control target
= control target key end

     0   :  { %9 = vsyncpa [#allocation3], 0  ;;  %s5550_s0 = inlined_call_operand.hbm [shape: s32[1,1,128], index: 0, kind: input, shape index: {}]   ;;  %s5551_s1 = inlined_call_operand.hbm [shape: s32[1,16,128], index: 1, kind: input, shape index: {}]   ;;  %s5552_s2 = inlined_call_operand.hbm [shape: f32[32,64], index: 2, kind: input, shape index: {}]   ;;  %s5553_s3 = inlined_call_operand.hbm [shape: f32[32,64], index: 3, kind: input, shape index: {}]   ;;  %s5554_s4 = inlined_call_operand.hbm [shape: f32[1,1,128], index: 4, kind: output, shape index: {}]  }
   0x1   :  { %10 = vsyncpa [#allocation6], 0 }
   0x2   :  { %11 = vsyncpa [#allocation9], 0 }
   0x3   :  { %12 = vsyncpa [#allocation4], 0  ;;  %s3684_s15 = smov [#allocation5]  }
   0x4   :  { %s28_s16 = sshll.u32 %s3684_s15, 4  ;;  %s29_s16 = int_to_ptr.vmem [resolvable:$true] %s28_s16 }
   0x5   :  { %s3584_s17 = scalar_lea.vmem %s29_s16, 256  ;;  %p3589_p1 = scmp.lt.s32.totalorder %s29_s16, %s29_s16 }
   0x6   :  { %p3585_p0 = scmp.ne.s32.totalorder %s29_s16, %s3584_s17  ;;  %p3590_p2 = scmp.lt.s32.totalorder %s3584_s17, %s3584_s17 }
   0x8   :  { %p3591_p3 = por %p3590_p2, %p3589_p1 }
   0xa   :  { %p3592_p4 = pnand %p3591_p3, %p3585_p0 }
   0xc   :  { %3595 = shalt.err (!%p3592_p4)
}
   0xd   :  { %s3685_s18 = smov 128   ;;  %s3686_s19 = smov 8  }
   0xe   :  { %34 = dma.hbm_to_vmem [thread:$0]  %s5551_s1, 256, %s29_s16, [#allocation6], %s3685_s18, %s3685_s18, %s3686_s19  }
   0xf   :  { %s3687_s22 = smov [#allocation2]   ;;  %s3688_s24 = smov [#allocation7]  }
  0x10   :  { %s19_s23 = sshll.u32 %s3687_s22, 4  ;;  %s40_s25 = sshll.u32 %s3688_s24, 4  ;;  %s20_s23 = int_to_ptr.vmem [resolvable:$true] %s19_s23  ;;  %s41_s25 = int_to_ptr.vmem [resolvable:$true] %s40_s25 }
  0x11   :  { %s3604_s26 = scalar_lea.vmem %s20_s23, 16  ;;  %s3608_s27 = scalar_lea.vmem %s20_s23, 32 }
  0x12   :  { %p3605_p5 = scmp.ne.s32.totalorder %s20_s23, %s3604_s26  ;;  %p3609_p6 = scmp.lt.s32.totalorder %s20_s23, %s20_s23 }
  0x13   :  { %p3610_p7 = scmp.lt.s32.totalorder %s3608_s27, %s3604_s26 }
  0x15   :  { %p3611_p8 = por %p3610_p7, %p3609_p6 }
  0x17   :  { %p3612_p9 = pnand %p3611_p8, %p3605_p5 }
  0x19   :  { %3615 = shalt.err (!%p3612_p9)
}
  0x1a   :  { %22 = dma.hbm_to_vmem [thread:$0]  %s5550_s0, 16, %s20_s23, [#allocation3]  }
  0x1b   :  { %s3624_s30 = scalar_lea.vmem %s41_s25, 512  ;;  %p3629_p11 = scmp.lt.s32.totalorder %s41_s25, %s41_s25 }
  0x1c   :  { %p3625_p10 = scmp.ne.s32.totalorder %s41_s25, %s3624_s30  ;;  %p3630_p12 = scmp.lt.s32.totalorder %s3624_s30, %s3624_s30 }
  0x1e   :  { %p3631_p13 = por %p3630_p12, %p3629_p11 }
  0x20   :  { %p3632_p0 = pnand %p3631_p13, %p3625_p10 }
  0x22   :  { %3635 = shalt.err (!%p3632_p0)
}
  0x23   :  { %46 = dma.hbm_to_vmem [thread:$0]  %s5552_s2, 512, %s41_s25, [#allocation6], %s3685_s18, %s3685_s18, %s3686_s19  }
  0x24   :  { %s3689_s6 = smov [#allocation8]  }
  0x25   :  { %s52_s7 = sshll.u32 %s3689_s6, 4  ;;  %s53_s7 = int_to_ptr.vmem [resolvable:$true] %s52_s7 }
  0x26   :  { %s3644_s8 = scalar_lea.vmem %s53_s7, 512  ;;  %p3649_p2 = scmp.lt.s32.totalorder %s53_s7, %s53_s7 }
  0x27   :  { %p3645_p1 = scmp.ne.s32.totalorder %s53_s7, %s3644_s8  ;;  %p3650_p3 = scmp.lt.s32.totalorder %s3644_s8, %s3644_s8 }
  0x29   :  { %p3651_p4 = por %p3650_p3, %p3649_p2 }
  0x2b   :  { %p3652_p5 = pnand %p3651_p4, %p3645_p1 }
  0x2d   :  { %3655 = shalt.err (!%p3652_p5)
}
  0x2e   :  { %58 = dma.hbm_to_vmem [thread:$0]  %s5553_s3, 512, %s53_s7, [#allocation9], %s3685_s18, %s3685_s18, %s3686_s19  }
  0x2f   :  { %3676 = dma.done.wait [#allocation3], 16  }
  0x30   :  { %3677 = vsyncadd [#allocation3], 4294967280 }
  0x31   :  { %3678 = dma.done.wait [#allocation6], 768  }
  0x32   :  { %3679 = vsyncadd [#allocation6], 4294966528 }
  0x33   :  { %3680 = dma.done.wait [#allocation9], 512  }
  0x34   :  { %3681 = vsyncadd [#allocation9], 4294966784  ;;  %v83_v0 = vlaneseq  ;;  %vm120_vm0 = vcmask 523264   ;;  %v3751_v6 = vld [vmem:[#allocation2] ss:$0 sm:$0xff]  ;;  %v3753_v7 = vld [vmem:[#allocation5] sm:$0xff] }
  0x35   :  { %v72_v8 = vld [vmem:[#allocation7] sm:$0xff]  ;;  %v3690_v11 = vmov 1.0   ;;  %v73_v19 = vld [vmem:[#allocation7 + $0x8] sm:$0xff]  ;;  %v3868_v26 = vld [vmem:[#allocation5 + $0x8] sm:$0xff]  ;;  %s3691_s2 = smov [#allocation10]  }
  0x36   :  { %v3739_v1 = vshrl.u32 %v83_v0, 7  ;;  %3130 = vmatprep.mubr.msk.f32.mxu0 %vm120_vm0, %v72_v8  ;;  %v3852_v23 = vld [vmem:[#allocation8] sm:$0xff]  ;;  %v3859_v24 = vld [vmem:[#allocation8 + $0x8] sm:$0xff]  ;;  %v74_v29 = vld [vmem:[#allocation7 + $0x10] sm:$0xff]  ;;  %s2558_s3 = sshll.u32 %s3691_s2, 4  ;;  %s2559_s3 = int_to_ptr.vmem [resolvable:$true] %s2558_s3 }
  0x37   :  { %3152 = vmatprep.mubr.msk.f32.mxu1 %vm120_vm0, %v3852_v23  ;;  %v3923_v31 = vld [vmem:[#allocation8 + $0x10] sm:$0xff]  ;;  %v75_v32 = vld [vmem:[#allocation7 + $0x18] sm:$0xff]  ;;  %s3656_s10 = scalar_lea.vmem %s2559_s3, 16  ;;  %s3660_s11 = scalar_lea.vmem %s2559_s3, 32 }
  0x38   :  { %v3742_v2 = vadd.s32 56, %v3739_v1  ;;  %v3745_v3 = vadd.s32 48, %v3739_v1  ;;  %v220_v4 = vsub.s32 0, %v3739_v1  ;;  %v3749_v5 = vadd.s32 40, %v3739_v1  ;;  %v3950_v33 = vld [vmem:[#allocation8 + $0x18] sm:$0xff]  ;;  %p3657_p6 = scmp.ne.s32.totalorder %s2559_s3, %s3656_s10  ;;  %p3661_p7 = scmp.lt.s32.totalorder %s2559_s3, %s2559_s3 }
  0x39   :  { %v3765_v10 = vadd.s32 32, %v3739_v1  ;;  %v3777_v12 = vadd.s32 24, %v3739_v1  ;;  %v3788_v13 = vadd.s32 16, %v3739_v1  ;;  %v3799_v14 = vadd.s32 8, %v3739_v1  ;;  %p3662_p8 = scmp.lt.s32.totalorder %s3660_s11, %s3656_s10 }
  0x3a   :  { %vm103_vm1 = vcmp.eq.s32.totalorder %v3742_v2, %v3751_v6  ;;  %vm102_vm2 = vcmp.eq.s32.totalorder %v3745_v3, %v3751_v6  ;;  %v3762_v9 = vrot.slane %v3753_v7, %v220_v4  ;;  %vm101_vm4 = vcmp.eq.s32.totalorder %v3749_v5, %v3751_v6 }
  0x3b   :  { %3114 = vmatprep.subr.msk.mxu0 %vm103_vm1, %v3690_v11  ;;  %vm100_vm6 = vcmp.eq.s32.totalorder %v3765_v10, %v3751_v6  ;;  %vm99_vm8 = vcmp.eq.s32.totalorder %v3777_v12, %v3751_v6  ;;  %v376_v15 = vsub.s32 1, %v3739_v1  ;;  %vm98_vm10 = vcmp.eq.s32.totalorder %v3788_v13, %v3751_v6  ;;  %p3663_p9 = por %p3662_p8, %p3661_p7 }
  0x3c   :  { %3115 = vmatpush3.msk.msra.mxu0 %vm103_vm1, %v3690_v11  ;;  %vm229_vm3 = vcmp.eq.s32.totalorder %v3742_v2, %v3762_v9  ;;  %vm228_vm5 = vcmp.eq.s32.totalorder %v3745_v3, %v3762_v9  ;;  %vm227_vm7 = vcmp.eq.s32.totalorder %v3749_v5, %v3762_v9  ;;  %vm226_vm9 = vcmp.eq.s32.totalorder %v3765_v10, %v3762_v9 }
  0x3d   :  { %3116 = vmatprep.subr.msk.mxu0 %vm102_vm2, %v3690_v11  ;;  %3136 = vmatprep.subr.msk.mxu1 %vm229_vm3, %v3690_v11  ;;  %vm225_vm11 = vcmp.eq.s32.totalorder %v3777_v12, %v3762_v9  ;;  %vm97_vm12 = vcmp.eq.s32.totalorder %v3799_v14, %v3751_v6  ;;  %vm224_vm13 = vcmp.eq.s32.totalorder %v3788_v13, %v3762_v9  ;;  %v520_v16 = vsub.s32 2, %v3739_v1  ;;  %p3664_p10 = pnand %p3663_p9, %p3657_p6 }
  0x3e   :  { %3117 = vmatpush3.msk.msra.mxu0 %vm102_vm2, %v3690_v11  ;;  %3137 = vmatpush3.msk.msra.mxu1 %vm229_vm3, %v3690_v11  ;;  %v3824_v17 = vrot.slane %v3753_v7, %v376_v15  ;;  %vm96_vm14 = vcmp.eq.s32.totalorder %v3739_v1, %v3751_v6  ;;  %vm223_vm15 = vcmp.eq.s32.totalorder %v3799_v14, %v3762_v9  ;;  %v1241_v18 = vsub.s32 7, %v3739_v1 }
  0x3f   :  { %3118 = vmatprep.subr.msk.mxu0 %vm101_vm4, %v3690_v11  ;;  %3138 = vmatprep.subr.msk.mxu1 %vm228_vm5, %v3690_v11  ;;  %vm222_vm1 = vcmp.eq.s32.totalorder %v3739_v1, %v3762_v9  ;;  %v3842_v20 = vrot.slane %v3753_v7, %v520_v16  ;;  %v664_v21 = vsub.s32 3, %v3739_v1  ;;  %v808_v22 = vsub.s32 4, %v3739_v1 }
  0x40   :  { %3119 = vmatpush3.msk.msra.mxu0 %vm101_vm4, %v3690_v11  ;;  %3139 = vmatpush3.msk.msra.mxu1 %vm228_vm5, %v3690_v11  ;;  %vm385_vm2 = vcmp.eq.s32.totalorder %v3742_v2, %v3824_v17  ;;  %vm384_vm3 = vcmp.eq.s32.totalorder %v3745_v3, %v3824_v17  ;;  %v3866_v25 = vrot.slane %v3753_v7, %v1241_v18  ;;  %v952_v38 = vsub.s32 5, %v3739_v1 }
  0x41   :  { %3120 = vmatprep.subr.msk.mxu0 %vm100_vm6, %v3690_v11  ;;  %3140 = vmatprep.subr.msk.mxu1 %vm227_vm7, %v3690_v11  ;;  %vm529_vm4 = vcmp.eq.s32.totalorder %v3742_v2, %v3842_v20  ;;  %v3883_v27 = vrot.slane %v3753_v7, %v664_v21  ;;  %vm383_vm5 = vcmp.eq.s32.totalorder %v3749_v5, %v3824_v17  ;;  %v1096_v39 = vsub.s32 6, %v3739_v1 }
  0x42   :  { %3121 = vmatpush3.msk.msra.mxu0 %vm100_vm6, %v3690_v11  ;;  %3141 = vmatpush3.msk.msra.mxu1 %vm227_vm7, %v3690_v11  ;;  %vm528_vm6 = vcmp.eq.s32.totalorder %v3745_v3, %v3842_v20  ;;  %v3898_v28 = vrot.slane %v3753_v7, %v808_v22  ;;  %vm382_vm7 = vcmp.eq.s32.totalorder %v3765_v10, %v3824_v17 }
  0x43   :  { %3122 = vmatprep.subr.msk.mxu0 %vm99_vm8, %v3690_v11  ;;  %3142 = vmatprep.subr.msk.mxu1 %vm226_vm9, %v3690_v11  ;;  %v3913_v30 = vrot.slane %v3868_v26, %v220_v4  ;;  %v4028_v34 = vrot.slane %v3868_v26, %v376_v15  ;;  %v4043_v35 = vrot.slane %v3868_v26, %v520_v16 }
  0x44   :  { %3123 = vmatpush3.msk.msra.mxu0 %vm99_vm8, %v3690_v11  ;;  %3143 = vmatpush3.msk.msra.mxu1 %vm226_vm9, %v3690_v11  ;;  %vm527_vm8 = vcmp.eq.s32.totalorder %v3749_v5, %v3842_v20  ;;  %vm381_vm9 = vcmp.eq.s32.totalorder %v3777_v12, %v3824_v17  ;;  %v4048_v36 = vrot.slane %v3868_v26, %v664_v21 }
  0x45   :  { %3124 = vmatprep.subr.msk.mxu0 %vm98_vm10, %v3690_v11  ;;  %3144 = vmatprep.subr.msk.mxu1 %vm225_vm11, %v3690_v11  ;;  %v4053_v37 = vrot.slane %v3868_v26, %v808_v22  ;;  %v4222_v40 = vrot.slane %v3868_v26, %v952_v38  ;;  %v4235_v41 = vrot.slane %v3868_v26, %v1096_v39 }
  0x46   :  { %3125 = vmatpush3.msk.msra.mxu0 %vm98_vm10, %v3690_v11  ;;  %3145 = vmatpush3.msk.msra.mxu1 %vm225_vm11, %v3690_v11  ;;  %vm526_vm10 = vcmp.eq.s32.totalorder %v3765_v10, %v3842_v20  ;;  %vm380_vm11 = vcmp.eq.s32.totalorder %v3788_v13, %v3824_v17  ;;  %v4240_v42 = vrot.slane %v3868_v26, %v1241_v18 }
  0x47   :  { %3126 = vmatprep.subr.msk.mxu0 %vm97_vm12, %v3690_v11  ;;  %3146 = vmatprep.subr.msk.mxu1 %vm224_vm13, %v3690_v11  ;;  %v4371_v43 = vrot.slane %v3753_v7, %v952_v38  ;;  %v4395_v44 = vrot.slane %v3753_v7, %v1096_v39 }
  0x48   :  { %3127 = vmatpush3.msk.msra.mxu0 %vm97_vm12, %v3690_v11  ;;  %3147 = vmatpush3.msk.msra.mxu1 %vm224_vm13, %v3690_v11  ;;  %vm525_vm12 = vcmp.eq.s32.totalorder %v3777_v12, %v3842_v20  ;;  %vm379_vm13 = vcmp.eq.s32.totalorder %v3799_v14, %v3824_v17 }
  0x49   :  { %3128 = vmatprep.subr.msk.mxu0 %vm96_vm14, %v3690_v11  ;;  %3148 = vmatprep.subr.msk.mxu1 %vm223_vm15, %v3690_v11 }
  0x4a   :  { %3129 = vmatpush3.msk.msra.mxu0 %vm96_vm14, %v3690_v11  ;;  %3149 = vmatpush3.msk.msra.mxu1 %vm223_vm15, %v3690_v11  ;;  %vm524_vm14 = vcmp.eq.s32.totalorder %v3788_v13, %v3842_v20  ;;  %vm378_vm15 = vcmp.eq.s32.totalorder %v3739_v1, %v3824_v17 }
  0x4b   :  { %3131 = vmatmul.mubr.msk.f32.vlgmr.msra.gmra.mxu0 %vm120_vm0, %v73_v19  ;;  %3150 = vmatprep.subr.msk.mxu1 %vm222_vm1, %v3690_v11 }
  0x4c   :  { %3158 = vmatprep.subr.msk.mxu0 %vm385_vm2, %v3690_v11  ;;  %3151 = vmatpush3.msk.msra.mxu1 %vm222_vm1, %v3690_v11  ;;  %vm1248_vm1 = vcmp.eq.s32.totalorder %v3749_v5, %v3866_v25 }
  0x4d   :  { %3159 = vmatpush3.msk.msra.mxu0 %vm385_vm2, %v3690_v11  ;;  %3153 = vmatmul.mubr.msk.f32.vlgmr.msra.gmra.mxu1 %vm120_vm0, %v3859_v24  ;;  %vm673_vm2 = vcmp.eq.s32.totalorder %v3742_v2, %v3883_v27 }
  0x4e   :  { %3160 = vmatprep.subr.msk.mxu0 %vm384_vm3, %v3690_v11  ;;  %3180 = vmatprep.subr.msk.mxu1 %vm529_vm4, %v3690_v11 }
  0x4f   :  { %3161 = vmatpush3.msk.msra.mxu0 %vm384_vm3, %v3690_v11  ;;  %3181 = vmatpush3.msk.msra.mxu1 %vm529_vm4, %v3690_v11  ;;  %vm2115_vm4 = vcmp.eq.s32.totalorder %v3788_v13, %v4222_v40  ;;  %vm2259_vm3 = vcmp.eq.s32.totalorder %v3799_v14, %v4235_v41 }
  0x50   :  { %3162 = vmatprep.subr.msk.mxu0 %vm383_vm5, %v3690_v11  ;;  %3182 = vmatprep.subr.msk.mxu1 %vm528_vm6, %v3690_v11 }
  0x51   :  { %3133 = vmatprep.mubr.msk.f32.mxu0 %vm120_vm0, %v74_v29  ;;  %3155 = vmatprep.mubr.msk.f32.mxu1 %vm120_vm0, %v3923_v31 }
  0x52   :  { %3163 = vmatpush3.msk.msra.mxu0 %vm383_vm5, %v3690_v11  ;;  %3183 = vmatpush3.msk.msra.mxu1 %vm528_vm6, %v3690_v11  ;;  %vm522_vm6 = vcmp.eq.s32.totalorder %v3739_v1, %v3842_v20  ;;  %vm2120_vm5 = vcmp.eq.s32.totalorder %v3742_v2, %v4222_v40 }
  0x53   :  { %3134 = vmatmul.mubr.msk.f32.gmra.mxu0 %vm120_vm0, %v75_v32  ;;  %3156 = vmatmul.mubr.msk.f32.gmra.mxu1 %vm120_vm0, %v3950_v33 }
  0x54   :  { %3164 = vmatprep.subr.msk.mxu0 %vm382_vm7, %v3690_v11  ;;  %3184 = vmatprep.subr.msk.mxu1 %vm527_vm8, %v3690_v11 }
  0x55   :  { %3165 = vmatpush3.msk.msra.mxu0 %vm382_vm7, %v3690_v11  ;;  %3185 = vmatpush3.msk.msra.mxu1 %vm527_vm8, %v3690_v11  ;;  %vm672_vm8 = vcmp.eq.s32.totalorder %v3745_v3, %v3883_v27  ;;  %vm5555_vm7 = vcmp.eq.s32.totalorder %v3799_v14, %v3842_v20 }
  0x56   :  { %3166 = vmatprep.subr.msk.mxu0 %vm381_vm9, %v3690_v11  ;;  %3186 = vmatprep.subr.msk.mxu1 %vm526_vm10, %v3690_v11 }
  0x57   :  { %3167 = vmatpush3.msk.msra.mxu0 %vm381_vm9, %v3690_v11  ;;  %3187 = vmatpush3.msk.msra.mxu1 %vm526_vm10, %v3690_v11  ;;  %vm817_vm9 = vcmp.eq.s32.totalorder %v3742_v2, %v3898_v28  ;;  %vm814_vm10 = vcmp.eq.s32.totalorder %v3765_v10, %v3898_v28 }
  0x58   :  { %3168 = vmatprep.subr.msk.mxu0 %vm380_vm11, %v3690_v11  ;;  %3188 = vmatprep.subr.msk.mxu1 %vm525_vm12, %v3690_v11 }
  0x59   :  { %3169 = vmatpush3.msk.msra.mxu0 %vm380_vm11, %v3690_v11  ;;  %3189 = vmatpush3.msk.msra.mxu1 %vm525_vm12, %v3690_v11  ;;  %vm671_vm11 = vcmp.eq.s32.totalorder %v3749_v5, %v3883_v27  ;;  %vm816_vm12 = vcmp.eq.s32.totalorder %v3745_v3, %v3898_v28 }
  0x5a   :  { %3170 = vmatprep.subr.msk.mxu0 %vm379_vm13, %v3690_v11  ;;  %3190 = vmatprep.subr.msk.mxu1 %vm524_vm14, %v3690_v11 }
  0x5b   :  { %3171 = vmatpush3.msk.msra.mxu0 %vm379_vm13, %v3690_v11  ;;  %3191 = vmatpush3.msk.msra.mxu1 %vm524_vm14, %v3690_v11  ;;  %vm670_vm14 = vcmp.eq.s32.totalorder %v3765_v10, %v3883_v27  ;;  %vm667_vm13 = vcmp.eq.s32.totalorder %v3799_v14, %v3883_v27 }
  0x5c   :  { %3172 = vmatprep.subr.msk.mxu0 %vm378_vm15, %v3690_v11  ;;  %3192 = vmatprep.subr.msk.mxu1 %vm5555_vm7, %v3690_v11 }
  0x5d   :  { %3173 = vmatpush3.msk.msra.mxu0 %vm378_vm15, %v3690_v11  ;;  %3174 = vmatprep.mubr.msk.f32.mxu0 %vm120_vm0, %v3852_v23  ;;  %vm815_vm15 = vcmp.eq.s32.totalorder %v3749_v5, %v3898_v28 }
  0x5e   :  { %3193 = vmatpush3.msk.msra.mxu1 %vm5555_vm7, %v3690_v11  ;;  %3175 = vmatmul.mubr.msk.f32.vlgmr.msra.gmra.mxu0 %vm120_vm0, %v3859_v24  ;;  %vm669_vm7 = vcmp.eq.s32.totalorder %v3777_v12, %v3883_v27 }
  0x5f   :  { %3194 = vmatprep.subr.msk.mxu1 %vm522_vm6, %v3690_v11  ;;  %3202 = vmatprep.subr.msk.mxu0 %vm673_vm2, %v3690_v11 }
  0x60   :  { %3195 = vmatpush3.msk.msra.mxu1 %vm522_vm6, %v3690_v11  ;;  %3196 = vmatprep.mubr.msk.f32.mxu1 %vm120_vm0, %v3852_v23  ;;  %vm668_vm6 = vcmp.eq.s32.totalorder %v3788_v13, %v3883_v27 }
  0x61   :  { %3203 = vmatpush3.msk.msra.mxu0 %vm673_vm2, %v3690_v11  ;;  %3197 = vmatmul.mubr.msk.f32.vlgmr.msra.gmra.mxu1 %vm120_vm0, %v3859_v24  ;;  %vm813_vm2 = vcmp.eq.s32.totalorder %v3777_v12, %v3898_v28 }
  0x62   :  { %3204 = vmatprep.subr.msk.mxu0 %vm672_vm8, %v3690_v11  ;;  %3224 = vmatprep.subr.msk.mxu1 %vm817_vm9, %v3690_v11 }
  0x63   :  { %3177 = vmatprep.mubr.msk.f32.mxu0 %vm120_vm0, %v3923_v31  ;;  %3205 = vmatpush3.msk.msra.mxu0 %vm672_vm8, %v3690_v11  ;;  %vm961_vm8 = vcmp.eq.s32.totalorder %v3742_v2, %v4371_v43 }
  0x64   :  { %3225 = vmatpush3.msk.msra.mxu1 %vm817_vm9, %v3690_v11  ;;  %3178 = vmatmul.mubr.msk.f32.gmra.mxu0 %vm120_vm0, %v3950_v33  ;;  %vm2262_vm9 = vcmp.eq.s32.totalorder %v3765_v10, %v4235_v41 }
  0x65   :  { %3206 = vmatprep.subr.msk.mxu0 %vm671_vm11, %v3690_v11  ;;  %3226 = vmatprep.subr.msk.mxu1 %vm816_vm12, %v3690_v11 }
  0x66   :  { %3199 = vmatprep.mubr.msk.f32.mxu1 %vm120_vm0, %v3923_v31  ;;  %3207 = vmatpush3.msk.msra.mxu0 %vm671_vm11, %v3690_v11  ;;  %vm2406_vm11 = vcmp.eq.s32.totalorder %v3777_v12, %v4240_v42 }
  0x67   :  { %3227 = vmatpush3.msk.msra.mxu1 %vm816_vm12, %v3690_v11  ;;  %3208 = vmatprep.subr.msk.mxu0 %vm670_vm14, %v3690_v11  ;;  %vm2409_vm12 = vcmp.eq.s32.totalorder %v3745_v3, %v4240_v42 }
  0x68   :  { %3200 = vmatmul.mubr.msk.f32.gmra.mxu1 %vm120_vm0, %v3950_v33  ;;  %3228 = vmatprep.subr.msk.mxu1 %vm815_vm15, %v3690_v11 }
  0x69   :  { %3209 = vmatpush3.msk.msra.mxu0 %vm670_vm14, %v3690_v11  ;;  %3229 = vmatpush3.msk.msra.mxu1 %vm815_vm15, %v3690_v11  ;;  %vm2405_vm15 = vcmp.eq.s32.totalorder %v3788_v13, %v4240_v42  ;;  %vm955_vm14 = vcmp.eq.s32.totalorder %v3799_v14, %v4371_v43 }
  0x6a   :  { %3210 = vmatprep.subr.msk.mxu0 %vm669_vm7, %v3690_v11  ;;  %3230 = vmatprep.subr.msk.mxu1 %vm814_vm10, %v3690_v11 }
  0x6b   :  { %3211 = vmatpush3.msk.msra.mxu0 %vm669_vm7, %v3690_v11  ;;  %3231 = vmatpush3.msk.msra.mxu1 %vm814_vm10, %v3690_v11  ;;  %vm812_vm7 = vcmp.eq.s32.totalorder %v3788_v13, %v3898_v28  ;;  %vm666_vm10 = vcmp.eq.s32.totalorder %v3739_v1, %v3883_v27 }
  0x6c   :  { %3212 = vmatprep.subr.msk.mxu0 %vm668_vm6, %v3690_v11  ;;  %3232 = vmatprep.subr.msk.mxu1 %vm813_vm2, %v3690_v11 }
  0x6d   :  { %3213 = vmatpush3.msk.msra.mxu0 %vm668_vm6, %v3690_v11  ;;  %3233 = vmatpush3.msk.msra.mxu1 %vm813_vm2, %v3690_v11  ;;  %vm811_vm6 = vcmp.eq.s32.totalorder %v3799_v14, %v3898_v28  ;;  %vm810_vm2 = vcmp.eq.s32.totalorder %v3739_v1, %v3898_v28 }
  0x6e   :  { %3214 = vmatprep.subr.msk.mxu0 %vm667_vm13, %v3690_v11  ;;  %3234 = vmatprep.subr.msk.mxu1 %vm812_vm7, %v3690_v11 }
  0x6f   :  { %3215 = vmatpush3.msk.msra.mxu0 %vm667_vm13, %v3690_v11  ;;  %3235 = vmatpush3.msk.msra.mxu1 %vm812_vm7, %v3690_v11  ;;  %vm960_vm13 = vcmp.eq.s32.totalorder %v3745_v3, %v4371_v43  ;;  %vm1105_vm7 = vcmp.eq.s32.totalorder %v3742_v2, %v4395_v44 }
  0x70   :  { %3216 = vmatprep.subr.msk.mxu0 %vm666_vm10, %v3690_v11  ;;  %3236 = vmatprep.subr.msk.mxu1 %vm811_vm6, %v3690_v11 }
  0x71   :  { %3217 = vmatpush3.msk.msra.mxu0 %vm666_vm10, %v3690_v11  ;;  %3218 = vmatprep.mubr.msk.f32.mxu0 %vm120_vm0, %v3852_v23  ;;  %vm959_vm10 = vcmp.eq.s32.totalorder %v3749_v5, %v4371_v43 }
  0x72   :  { %3237 = vmatpush3.msk.msra.mxu1 %vm811_vm6, %v3690_v11  ;;  %3219 = vmatmul.mubr.msk.f32.vlgmr.msra.gmra.mxu0 %vm120_vm0, %v3859_v24  ;;  %vm1104_vm6 = vcmp.eq.s32.totalorder %v3745_v3, %v4395_v44 }
  0x73   :  { %3238 = vmatprep.subr.msk.mxu1 %vm810_vm2, %v3690_v11  ;;  %3246 = vmatprep.subr.msk.mxu0 %vm961_vm8, %v3690_v11 }
  0x74   :  { %3239 = vmatpush3.msk.msra.mxu1 %vm810_vm2, %v3690_v11  ;;  %3240 = vmatprep.mubr.msk.f32.mxu1 %vm120_vm0, %v3852_v23  ;;  %vm1103_vm2 = vcmp.eq.s32.totalorder %v3749_v5, %v4395_v44 }
  0x75   :  { %3247 = vmatpush3.msk.msra.mxu0 %vm961_vm8, %v3690_v11  ;;  %3241 = vmatmul.mubr.msk.f32.vlgmr.msra.gmra.mxu1 %vm120_vm0, %v3859_v24  ;;  %vm958_vm8 = vcmp.eq.s32.totalorder %v3765_v10, %v4371_v43 }
  0x76   :  { %3248 = vmatprep.subr.msk.mxu0 %vm960_vm13, %v3690_v11  ;;  %3268 = vmatprep.subr.msk.mxu1 %vm1105_vm7, %v3690_v11 }
  0x77   :  { %3221 = vmatprep.mubr.msk.f32.mxu0 %vm120_vm0, %v3923_v31  ;;  %3249 = vmatpush3.msk.msra.mxu0 %vm960_vm13, %v3690_v11  ;;  %vm957_vm13 = vcmp.eq.s32.totalorder %v3777_v12, %v4371_v43 }
  0x78   :  { %3269 = vmatpush3.msk.msra.mxu1 %vm1105_vm7, %v3690_v11  ;;  %3222 = vmatmul.mubr.msk.f32.gmra.mxu0 %vm120_vm0, %v3950_v33  ;;  %vm1102_vm7 = vcmp.eq.s32.totalorder %v3765_v10, %v4395_v44 }
  0x79   :  { %3250 = vmatprep.subr.msk.mxu0 %vm959_vm10, %v3690_v11  ;;  %3270 = vmatprep.subr.msk.mxu1 %vm1104_vm6, %v3690_v11 }
  0x7a   :  { %3243 = vmatprep.mubr.msk.f32.mxu1 %vm120_vm0, %v3923_v31  ;;  %3251 = vmatpush3.msk.msra.mxu0 %vm959_vm10, %v3690_v11  ;;  %vm956_vm10 = vcmp.eq.s32.totalorder %v3788_v13, %v4371_v43 }
  0x7b   :  { %3271 = vmatpush3.msk.msra.mxu1 %vm1104_vm6, %v3690_v11  ;;  %3252 = vmatprep.subr.msk.mxu0 %vm958_vm8, %v3690_v11  ;;  %vm1101_vm6 = vcmp.eq.s32.totalorder %v3777_v12, %v4395_v44 }
  0x7c   :  { %3244 = vmatmul.mubr.msk.f32.gmra.mxu1 %vm120_vm0, %v3950_v33  ;;  %3272 = vmatprep.subr.msk.mxu1 %vm1103_vm2, %v3690_v11 }
  0x7d   :  { %3253 = vmatpush3.msk.msra.mxu0 %vm958_vm8, %v3690_v11  ;;  %3273 = vmatpush3.msk.msra.mxu1 %vm1103_vm2, %v3690_v11  ;;  %vm1100_vm8 = vcmp.eq.s32.totalorder %v3788_v13, %v4395_v44  ;;  %vm954_vm2 = vcmp.eq.s32.totalorder %v3739_v1, %v4371_v43 }
  0x7e   :  { %3254 = vmatprep.subr.msk.mxu0 %vm957_vm13, %v3690_v11  ;;  %3274 = vmatprep.subr.msk.mxu1 %vm1102_vm7, %v3690_v11 }
  0x7f   :  { %3255 = vmatpush3.msk.msra.mxu0 %vm957_vm13, %v3690_v11  ;;  %3275 = vmatpush3.msk.msra.mxu1 %vm1102_vm7, %v3690_v11  ;;  %vm1099_vm13 = vcmp.eq.s32.totalorder %v3799_v14, %v4395_v44  ;;  %vm1098_vm7 = vcmp.eq.s32.totalorder %v3739_v1, %v4395_v44 }
  0x80   :  { %3256 = vmatprep.subr.msk.mxu0 %vm956_vm10, %v3690_v11  ;;  %3276 = vmatprep.subr.msk.mxu1 %vm1101_vm6, %v3690_v11 }
  0x81   :  { %3257 = vmatpush3.msk.msra.mxu0 %vm956_vm10, %v3690_v11  ;;  %3277 = vmatpush3.msk.msra.mxu1 %vm1101_vm6, %v3690_v11  ;;  %vm5558_vm6 = vcmp.eq.s32.totalorder %v3745_v3, %v3866_v25 }
  0x82   :  { %3258 = vmatprep.subr.msk.mxu0 %vm955_vm14, %v3690_v11  ;;  %3278 = vmatprep.subr.msk.mxu1 %vm1100_vm8, %v3690_v11 }
  0x83   :  { %3259 = vmatpush3.msk.msra.mxu0 %vm955_vm14, %v3690_v11  ;;  %3279 = vmatpush3.msk.msra.mxu1 %vm1100_vm8, %v3690_v11  ;;  %vm5556_vm14 = vcmp.eq.s32.totalorder %v3742_v2, %v3866_v25  ;;  %vm5559_vm8 = vcmp.eq.s32.totalorder %v3742_v2, %v3913_v30 }
  0x84   :  { %3260 = vmatprep.subr.msk.mxu0 %vm954_vm2, %v3690_v11  ;;  %3280 = vmatprep.subr.msk.mxu1 %vm1099_vm13, %v3690_v11  ;;  %vm5557_vm10 = vmmov %vm5556_vm14 }
  0x85   :  { %3261 = vmatpush3.msk.msra.mxu0 %vm954_vm2, %v3690_v11  ;;  %3262 = vmatprep.mubr.msk.f32.mxu0 %vm120_vm0, %v3852_v23  ;;  %vm5560_vm2 = vmmov %vm5558_vm6 }
  0x86   :  { %3281 = vmatpush3.msk.msra.mxu1 %vm1099_vm13, %v3690_v11  ;;  %3263 = vmatmul.mubr.msk.f32.vlgmr.msra.gmra.mxu0 %vm120_vm0, %v3859_v24  ;;  %vm5561_vm13 = vmmov %vm5559_vm8 }
  0x87   :  { %3282 = vmatprep.subr.msk.mxu1 %vm1098_vm7, %v3690_v11  ;;  %3290 = vmatprep.subr.msk.mxu0 %vm5556_vm14, %v3690_v11 }
  0x88   :  { %3283 = vmatpush3.msk.msra.mxu1 %vm1098_vm7, %v3690_v11  ;;  %3284 = vmatprep.mubr.msk.f32.mxu1 %vm120_vm0, %v3852_v23  ;;  %vm5562_vm7 = vcmp.eq.s32.totalorder %v3745_v3, %v3913_v30 }
  0x89   :  { %3291 = vmatpush3.msk.msra.mxu0 %vm5557_vm10, %v3690_v11  ;;  %3285 = vmatmul.mubr.msk.f32.vlgmr.msra.gmra.mxu1 %vm120_vm0, %v3859_v24  ;;  %vm5563_vm14 = vmmov %vm5562_vm7  ;;  %vm5564_vm10 = vcmp.eq.s32.totalorder %v3765_v10, %v3866_v25 }
  0x8a   :  { %3292 = vmatprep.subr.msk.mxu0 %vm5558_vm6, %v3690_v11  ;;  %3312 = vmatprep.subr.msk.mxu1 %vm5559_vm8, %v3690_v11  ;;  %vm5565_vm6 = vcmp.eq.s32.totalorder %v3749_v5, %v3913_v30 }
  0x8b   :  { %3265 = vmatprep.mubr.msk.f32.mxu0 %vm120_vm0, %v3923_v31  ;;  %3293 = vmatpush3.msk.msra.mxu0 %vm5560_vm2, %v3690_v11  ;;  %vm5567_vm8 = vmmov %vm5565_vm6  ;;  %vm5568_vm2 = vcmp.eq.s32.totalorder %v3777_v12, %v3866_v25 }
  0x8c   :  { %3313 = vmatpush3.msk.msra.mxu1 %vm5561_vm13, %v3690_v11  ;;  %3266 = vmatmul.mubr.msk.f32.gmra.mxu0 %vm120_vm0, %v3950_v33  ;;  %vm5569_vm13 = vcmp.eq.s32.totalorder %v3765_v10, %v3913_v30 }
  0x8d   :  { %3294 = vmatprep.subr.msk.mxu0 %vm1248_vm1, %v3690_v11  ;;  %3314 = vmatprep.subr.msk.mxu1 %vm5562_vm7, %v3690_v11  ;;  %vm5570_vm7 = vmmov %vm5568_vm2 }
  0x8e   :  { %3287 = vmatprep.mubr.msk.f32.mxu1 %vm120_vm0, %v3923_v31  ;;  %3295 = vmatpush3.msk.msra.mxu0 %vm1248_vm1, %v3690_v11  ;;  %vm5566_vm1 = vmmov %vm5564_vm10 }
  0x8f   :  { %3315 = vmatpush3.msk.msra.mxu1 %vm5563_vm14, %v3690_v11  ;;  %3296 = vmatprep.subr.msk.mxu0 %vm5564_vm10, %v3690_v11  ;;  %vm5571_vm14 = vmmov %vm5569_vm13  ;;  %vm5572_vm10 = vcmp.eq.s32.totalorder %v3788_v13, %v3866_v25 }
  0x90   :  { %3288 = vmatmul.mubr.msk.f32.gmra.mxu1 %vm120_vm0, %v3950_v33  ;;  %3316 = vmatprep.subr.msk.mxu1 %vm5565_vm6, %v3690_v11  ;;  %vm5573_vm6 = vcmp.eq.s32.totalorder %v3777_v12, %v3913_v30 }
  0x91   :  { %3297 = vmatpush3.msk.msra.mxu0 %vm5566_vm1, %v3690_v11  ;;  %3317 = vmatpush3.msk.msra.mxu1 %vm5567_vm8, %v3690_v11  ;;  %vm5574_vm1 = vmmov %vm5572_vm10 }
  0x92   :  { %3298 = vmatprep.subr.msk.mxu0 %vm5568_vm2, %v3690_v11  ;;  %3318 = vmatprep.subr.msk.mxu1 %vm5569_vm13, %v3690_v11  ;;  %vm5575_vm8 = vmmov %vm5573_vm6  ;;  %vm5576_vm2 = vcmp.eq.s32.totalorder %v3799_v14, %v3866_v25  ;;  %vm5577_vm13 = vcmp.eq.s32.totalorder %v3788_v13, %v3913_v30 }
  0x93   :  { %3299 = vmatpush3.msk.msra.mxu0 %vm5570_vm7, %v3690_v11  ;;  %3319 = vmatpush3.msk.msra.mxu1 %vm5571_vm14, %v3690_v11  ;;  %vm5578_vm7 = vmmov %vm5576_vm2 }
  0x94   :  { %3300 = vmatprep.subr.msk.mxu0 %vm5572_vm10, %v3690_v11  ;;  %3320 = vmatprep.subr.msk.mxu1 %vm5573_vm6, %v3690_v11  ;;  %vm5579_vm14 = vmmov %vm5577_vm13  ;;  %vm5580_vm10 = vcmp.eq.s32.totalorder %v3739_v1, %v3866_v25  ;;  %vm5581_vm6 = vcmp.eq.s32.totalorder %v3799_v14, %v3913_v30 }
  0x95   :  { %3301 = vmatpush3.msk.msra.mxu0 %vm5574_vm1, %v3690_v11  ;;  %3321 = vmatpush3.msk.msra.mxu1 %vm5575_vm8, %v3690_v11  ;;  %vm5582_vm1 = vmmov %vm5580_vm10 }
  0x96   :  { %3302 = vmatprep.subr.msk.mxu0 %vm5576_vm2, %v3690_v11  ;;  %3322 = vmatprep.subr.msk.mxu1 %vm5577_vm13, %v3690_v11  ;;  %vm5583_vm8 = vmmov %vm5581_vm6  ;;  %vm5584_vm2 = vcmp.eq.s32.totalorder %v3739_v1, %v3913_v30  ;;  %vm5585_vm13 = vcmp.eq.s32.totalorder %v3742_v2, %v4028_v34 }
  0x97   :  { %3303 = vmatpush3.msk.msra.mxu0 %vm5578_vm7, %v3690_v11  ;;  %3323 = vmatpush3.msk.msra.mxu1 %vm5579_vm14, %v3690_v11  ;;  %vm5586_vm7 = vmmov %vm5584_vm2 }
  0x98   :  { %3304 = vmatprep.subr.msk.mxu0 %vm5580_vm10, %v3690_v11  ;;  %3324 = vmatprep.subr.msk.mxu1 %vm5581_vm6, %v3690_v11  ;;  %vm5587_vm14 = vmmov %vm5585_vm13  ;;  %vm5588_vm10 = vcmp.eq.s32.totalorder %v3745_v3, %v4028_v34  ;;  %vm5589_vm6 = vcmp.eq.s32.totalorder %v3742_v2, %v4043_v35 }
  0x99   :  { %3305 = vmatpush3.msk.msra.mxu0 %vm5582_vm1, %v3690_v11  ;;  %3306 = vmatprep.mubr.msk.f32.mxu0 %vm120_vm0, %v3852_v23  ;;  %vm5590_vm1 = vmmov %vm5588_vm10 }
  0x9a   :  { %3325 = vmatpush3.msk.msra.mxu1 %vm5583_vm8, %v3690_v11  ;;  %3307 = vmatmul.mubr.msk.f32.vlgmr.msra.gmra.mxu0 %vm120_vm0, %v3859_v24  ;;  %vm5591_vm8 = vmmov %vm5589_vm6 }
  0x9b   :  { %3326 = vmatprep.subr.msk.mxu1 %vm5584_vm2, %v3690_v11  ;;  %3334 = vmatprep.subr.msk.mxu0 %vm5585_vm13, %v3690_v11  ;;  %vm5592_vm2 = vcmp.eq.s32.totalorder %v3749_v5, %v4028_v34  ;;  %vm5593_vm13 = vcmp.eq.s32.totalorder %v3745_v3, %v4043_v35 }
  0x9c   :  { %3327 = vmatpush3.msk.msra.mxu1 %vm5586_vm7, %v3690_v11  ;;  %3328 = vmatprep.mubr.msk.f32.mxu1 %vm120_vm0, %v3852_v23  ;;  %vm5594_vm7 = vmmov %vm5592_vm2 }
  0x9d   :  { %3335 = vmatpush3.msk.msra.mxu0 %vm5587_vm14, %v3690_v11  ;;  %3329 = vmatmul.mubr.msk.f32.vlgmr.msra.gmra.mxu1 %vm120_vm0, %v3859_v24  ;;  %vm5595_vm14 = vmmov %vm5593_vm13 }
  0x9e   :  { %3336 = vmatprep.subr.msk.mxu0 %vm5588_vm10, %v3690_v11  ;;  %3356 = vmatprep.subr.msk.mxu1 %vm5589_vm6, %v3690_v11  ;;  %vm5596_vm10 = vcmp.eq.s32.totalorder %v3765_v10, %v4028_v34  ;;  %vm5597_vm6 = vcmp.eq.s32.totalorder %v3749_v5, %v4043_v35 }
  0x9f   :  { %3309 = vmatprep.mubr.msk.f32.mxu0 %vm120_vm0, %v3923_v31  ;;  %3337 = vmatpush3.msk.msra.mxu0 %vm5590_vm1, %v3690_v11  ;;  %vm5598_vm1 = vmmov %vm5596_vm10 }
  0xa0   :  { %3357 = vmatpush3.msk.msra.mxu1 %vm5591_vm8, %v3690_v11  ;;  %3310 = vmatmul.mubr.msk.f32.gmra.mxu0 %vm120_vm0, %v3950_v33  ;;  %vm5599_vm8 = vmmov %vm5597_vm6 }
  0xa1   :  { %3338 = vmatprep.subr.msk.mxu0 %vm5592_vm2, %v3690_v11  ;;  %3358 = vmatprep.subr.msk.mxu1 %vm5593_vm13, %v3690_v11  ;;  %vm5600_vm2 = vcmp.eq.s32.totalorder %v3777_v12, %v4028_v34  ;;  %vm5601_vm13 = vcmp.eq.s32.totalorder %v3765_v10, %v4043_v35 }
  0xa2   :  { %3331 = vmatprep.mubr.msk.f32.mxu1 %vm120_vm0, %v3923_v31  ;;  %3339 = vmatpush3.msk.msra.mxu0 %vm5594_vm7, %v3690_v11  ;;  %vm5602_vm7 = vmmov %vm5600_vm2 }
  0xa3   :  { %3359 = vmatpush3.msk.msra.mxu1 %vm5595_vm14, %v3690_v11  ;;  %3340 = vmatprep.subr.msk.mxu0 %vm5596_vm10, %v3690_v11  ;;  %vm5603_vm14 = vmmov %vm5601_vm13  ;;  %vm5604_vm10 = vcmp.eq.s32.totalorder %v3788_v13, %v4028_v34 }
  0xa4   :  { %3332 = vmatmul.mubr.msk.f32.gmra.mxu1 %vm120_vm0, %v3950_v33  ;;  %3360 = vmatprep.subr.msk.mxu1 %vm5597_vm6, %v3690_v11  ;;  %vm5605_vm6 = vcmp.eq.s32.totalorder %v3777_v12, %v4043_v35 }
  0xa5   :  { %3341 = vmatpush3.msk.msra.mxu0 %vm5598_vm1, %v3690_v11  ;;  %3361 = vmatpush3.msk.msra.mxu1 %vm5599_vm8, %v3690_v11  ;;  %vm5606_vm1 = vmmov %vm5604_vm10 }
  0xa6   :  { %3342 = vmatprep.subr.msk.mxu0 %vm5600_vm2, %v3690_v11  ;;  %3362 = vmatprep.subr.msk.mxu1 %vm5601_vm13, %v3690_v11  ;;  %vm5607_vm8 = vmmov %vm5605_vm6  ;;  %vm5608_vm2 = vcmp.eq.s32.totalorder %v3799_v14, %v4028_v34  ;;  %vm5609_vm13 = vcmp.eq.s32.totalorder %v3788_v13, %v4043_v35 }
  0xa7   :  { %3343 = vmatpush3.msk.msra.mxu0 %vm5602_vm7, %v3690_v11  ;;  %3363 = vmatpush3.msk.msra.mxu1 %vm5603_vm14, %v3690_v11  ;;  %vm5610_vm7 = vmmov %vm5608_vm2 }
  0xa8   :  { %3344 = vmatprep.subr.msk.mxu0 %vm5604_vm10, %v3690_v11  ;;  %3364 = vmatprep.subr.msk.mxu1 %vm5605_vm6, %v3690_v11  ;;  %vm5611_vm14 = vmmov %vm5609_vm13  ;;  %vm5612_vm10 = vcmp.eq.s32.totalorder %v3739_v1, %v4028_v34  ;;  %vm5613_vm6 = vcmp.eq.s32.totalorder %v3799_v14, %v4043_v35 }
  0xa9   :  { %3345 = vmatpush3.msk.msra.mxu0 %vm5606_vm1, %v3690_v11  ;;  %3365 = vmatpush3.msk.msra.mxu1 %vm5607_vm8, %v3690_v11  ;;  %vm5614_vm1 = vmmov %vm5612_vm10 }
  0xaa   :  { %3346 = vmatprep.subr.msk.mxu0 %vm5608_vm2, %v3690_v11  ;;  %3366 = vmatprep.subr.msk.mxu1 %vm5609_vm13, %v3690_v11  ;;  %vm5615_vm8 = vmmov %vm5613_vm6  ;;  %vm5616_vm2 = vcmp.eq.s32.totalorder %v3739_v1, %v4043_v35  ;;  %vm5617_vm13 = vcmp.eq.s32.totalorder %v3742_v2, %v4048_v36 }
  0xab   :  { %3347 = vmatpush3.msk.msra.mxu0 %vm5610_vm7, %v3690_v11  ;;  %3367 = vmatpush3.msk.msra.mxu1 %vm5611_vm14, %v3690_v11  ;;  %vm5618_vm7 = vmmov %vm5616_vm2 }
  0xac   :  { %3348 = vmatprep.subr.msk.mxu0 %vm5612_vm10, %v3690_v11  ;;  %3368 = vmatprep.subr.msk.mxu1 %vm5613_vm6, %v3690_v11  ;;  %vm5619_vm14 = vmmov %vm5617_vm13  ;;  %vm5620_vm10 = vcmp.eq.s32.totalorder %v3745_v3, %v4048_v36  ;;  %vm5621_vm6 = vcmp.eq.s32.totalorder %v3742_v2, %v4053_v37 }
  0xad   :  { %3349 = vmatpush3.msk.msra.mxu0 %vm5614_vm1, %v3690_v11  ;;  %3350 = vmatprep.mubr.msk.f32.mxu0 %vm120_vm0, %v3852_v23  ;;  %vm5622_vm1 = vmmov %vm5620_vm10 }
  0xae   :  { %3369 = vmatpush3.msk.msra.mxu1 %vm5615_vm8, %v3690_v11  ;;  %3351 = vmatmul.mubr.msk.f32.vlgmr.msra.gmra.mxu0 %vm120_vm0, %v3859_v24  ;;  %vm5623_vm8 = vmmov %vm5621_vm6 }
  0xaf   :  { %3370 = vmatprep.subr.msk.mxu1 %vm5616_vm2, %v3690_v11  ;;  %3378 = vmatprep.subr.msk.mxu0 %vm5617_vm13, %v3690_v11  ;;  %vm5624_vm2 = vcmp.eq.s32.totalorder %v3749_v5, %v4048_v36  ;;  %vm5625_vm13 = vcmp.eq.s32.totalorder %v3745_v3, %v4053_v37 }
  0xb0   :  { %3371 = vmatpush3.msk.msra.mxu1 %vm5618_vm7, %v3690_v11  ;;  %3372 = vmatprep.mubr.msk.f32.mxu1 %vm120_vm0, %v3852_v23  ;;  %vm5626_vm7 = vmmov %vm5624_vm2 }
  0xb1   :  { %3379 = vmatpush3.msk.msra.mxu0 %vm5619_vm14, %v3690_v11  ;;  %3373 = vmatmul.mubr.msk.f32.vlgmr.msra.gmra.mxu1 %vm120_vm0, %v3859_v24  ;;  %vm5627_vm14 = vmmov %vm5625_vm13 }
  0xb2   :  { %3380 = vmatprep.subr.msk.mxu0 %vm5620_vm10, %v3690_v11  ;;  %3400 = vmatprep.subr.msk.mxu1 %vm5621_vm6, %v3690_v11  ;;  %vm5628_vm10 = vcmp.eq.s32.totalorder %v3765_v10, %v4048_v36  ;;  %vm5629_vm6 = vcmp.eq.s32.totalorder %v3749_v5, %v4053_v37 }
  0xb3   :  { %3353 = vmatprep.mubr.msk.f32.mxu0 %vm120_vm0, %v3923_v31  ;;  %3381 = vmatpush3.msk.msra.mxu0 %vm5622_vm1, %v3690_v11  ;;  %vm5630_vm1 = vmmov %vm5628_vm10 }
  0xb4   :  { %3401 = vmatpush3.msk.msra.mxu1 %vm5623_vm8, %v3690_v11  ;;  %3354 = vmatmul.mubr.msk.f32.gmra.mxu0 %vm120_vm0, %v3950_v33  ;;  %vm5631_vm8 = vmmov %vm5629_vm6 }
  0xb5   :  { %3382 = vmatprep.subr.msk.mxu0 %vm5624_vm2, %v3690_v11  ;;  %3402 = vmatprep.subr.msk.mxu1 %vm5625_vm13, %v3690_v11  ;;  %vm5632_vm2 = vcmp.eq.s32.totalorder %v3777_v12, %v4048_v36  ;;  %vm5633_vm13 = vcmp.eq.s32.totalorder %v3765_v10, %v4053_v37 }
  0xb6   :  { %3375 = vmatprep.mubr.msk.f32.mxu1 %vm120_vm0, %v3923_v31  ;;  %3383 = vmatpush3.msk.msra.mxu0 %vm5626_vm7, %v3690_v11  ;;  %vm5634_vm7 = vmmov %vm5632_vm2 }
  0xb7   :  { %3403 = vmatpush3.msk.msra.mxu1 %vm5627_vm14, %v3690_v11  ;;  %3384 = vmatprep.subr.msk.mxu0 %vm5628_vm10, %v3690_v11  ;;  %vm5635_vm14 = vmmov %vm5633_vm13  ;;  %vm5636_vm10 = vcmp.eq.s32.totalorder %v3788_v13, %v4048_v36 }
  0xb8   :  { %3376 = vmatmul.mubr.msk.f32.gmra.mxu1 %vm120_vm0, %v3950_v33  ;;  %3404 = vmatprep.subr.msk.mxu1 %vm5629_vm6, %v3690_v11  ;;  %vm5637_vm6 = vcmp.eq.s32.totalorder %v3777_v12, %v4053_v37 }
  0xb9   :  { %3385 = vmatpush3.msk.msra.mxu0 %vm5630_vm1, %v3690_v11  ;;  %3405 = vmatpush3.msk.msra.mxu1 %vm5631_vm8, %v3690_v11  ;;  %vm5638_vm1 = vmmov %vm5636_vm10 }
  0xba   :  { %3386 = vmatprep.subr.msk.mxu0 %vm5632_vm2, %v3690_v11  ;;  %3406 = vmatprep.subr.msk.mxu1 %vm5633_vm13, %v3690_v11  ;;  %vm5639_vm8 = vmmov %vm5637_vm6  ;;  %vm5640_vm2 = vcmp.eq.s32.totalorder %v3799_v14, %v4048_v36  ;;  %vm5641_vm13 = vcmp.eq.s32.totalorder %v3788_v13, %v4053_v37 }
  0xbb   :  { %3387 = vmatpush3.msk.msra.mxu0 %vm5634_vm7, %v3690_v11  ;;  %3407 = vmatpush3.msk.msra.mxu1 %vm5635_vm14, %v3690_v11  ;;  %vm5642_vm7 = vmmov %vm5640_vm2 }
  0xbc   :  { %3388 = vmatprep.subr.msk.mxu0 %vm5636_vm10, %v3690_v11  ;;  %3408 = vmatprep.subr.msk.mxu1 %vm5637_vm6, %v3690_v11  ;;  %vm5643_vm14 = vmmov %vm5641_vm13  ;;  %vm5644_vm10 = vcmp.eq.s32.totalorder %v3739_v1, %v4048_v36  ;;  %vm5645_vm6 = vcmp.eq.s32.totalorder %v3799_v14, %v4053_v37 }
  0xbd   :  { %3389 = vmatpush3.msk.msra.mxu0 %vm5638_vm1, %v3690_v11  ;;  %3409 = vmatpush3.msk.msra.mxu1 %vm5639_vm8, %v3690_v11  ;;  %vm5646_vm1 = vmmov %vm5644_vm10 }
  0xbe   :  { %3390 = vmatprep.subr.msk.mxu0 %vm5640_vm2, %v3690_v11  ;;  %3410 = vmatprep.subr.msk.mxu1 %vm5641_vm13, %v3690_v11  ;;  %vm5647_vm8 = vmmov %vm5645_vm6  ;;  %vm5648_vm2 = vcmp.eq.s32.totalorder %v3739_v1, %v4053_v37 }
  0xbf   :  { %3391 = vmatpush3.msk.msra.mxu0 %vm5642_vm7, %v3690_v11  ;;  %3411 = vmatpush3.msk.msra.mxu1 %vm5643_vm14, %v3690_v11  ;;  %vm5649_vm13 = vmmov %vm5648_vm2  ;;  %vm5650_vm7 = vcmp.eq.s32.totalorder %v3745_v3, %v4222_v40  ;;  %vm5651_vm14 = vcmp.eq.s32.totalorder %v3742_v2, %v4235_v41 }
  0xc0   :  { %3392 = vmatprep.subr.msk.mxu0 %vm5644_vm10, %v3690_v11  ;;  %3412 = vmatprep.subr.msk.mxu1 %vm5645_vm6, %v3690_v11  ;;  %vm5653_vm10 = vmmov %vm5651_vm14  ;;  %vm5654_vm6 = vcmp.eq.s32.totalorder %v3749_v5, %v4222_v40 }
  0xc1   :  { %3393 = vmatpush3.msk.msra.mxu0 %vm5646_vm1, %v3690_v11  ;;  %3394 = vmatprep.mubr.msk.f32.mxu0 %vm120_vm0, %v3852_v23  ;;  %vm5655_vm1 = vcmp.eq.s32.totalorder %v3745_v3, %v4235_v41 }
  0xc2   :  { %3413 = vmatpush3.msk.msra.mxu1 %vm5647_vm8, %v3690_v11  ;;  %3395 = vmatmul.mubr.msk.f32.vlgmr.msra.gmra.mxu0 %vm120_vm0, %v3859_v24  ;;  %vm5656_vm8 = vmmov %vm5654_vm6 }
  0xc3   :  { %3414 = vmatprep.subr.msk.mxu1 %vm5648_vm2, %v3690_v11  ;;  %3422 = vmatprep.subr.msk.mxu0 %vm2120_vm5, %v3690_v11  ;;  %vm5657_vm2 = vmmov %vm5655_vm1 }
  0xc4   :  { %3415 = vmatpush3.msk.msra.mxu1 %vm5649_vm13, %v3690_v11  ;;  %3416 = vmatprep.mubr.msk.f32.mxu1 %vm120_vm0, %v3852_v23  ;;  %vm5658_vm13 = vcmp.eq.s32.totalorder %v3765_v10, %v4222_v40 }
  0xc5   :  { %3423 = vmatpush3.msk.msra.mxu0 %vm2120_vm5, %v3690_v11  ;;  %3417 = vmatmul.mubr.msk.f32.vlgmr.msra.gmra.mxu1 %vm120_vm0, %v3859_v24  ;;  %vm5652_vm5 = vmmov %vm5650_vm7 }
  0xc6   :  { %3424 = vmatprep.subr.msk.mxu0 %vm5650_vm7, %v3690_v11  ;;  %3444 = vmatprep.subr.msk.mxu1 %vm5651_vm14, %v3690_v11  ;;  %vm5659_vm7 = vcmp.eq.s32.totalorder %v3749_v5, %v4235_v41  ;;  %vm5660_vm14 = vmmov %vm5658_vm13 }
  0xc7   :  { %3397 = vmatprep.mubr.msk.f32.mxu0 %vm120_vm0, %v3923_v31  ;;  %3425 = vmatpush3.msk.msra.mxu0 %vm5652_vm5, %v3690_v11  ;;  %vm5661_vm5 = vmmov %vm5659_vm7 }
  0xc8   :  { %3445 = vmatpush3.msk.msra.mxu1 %vm5653_vm10, %v3690_v11  ;;  %3398 = vmatmul.mubr.msk.f32.gmra.mxu0 %vm120_vm0, %v3950_v33  ;;  %vm5662_vm10 = vcmp.eq.s32.totalorder %v3777_v12, %v4222_v40 }
  0xc9   :  { %3426 = vmatprep.subr.msk.mxu0 %vm5654_vm6, %v3690_v11  ;;  %3446 = vmatprep.subr.msk.mxu1 %vm5655_vm1, %v3690_v11  ;;  %vm5663_vm6 = vmmov %vm5662_vm10  ;;  %vm5664_vm1 = vcmp.eq.s32.totalorder %v3777_v12, %v4235_v41 }
  0xca   :  { %3419 = vmatprep.mubr.msk.f32.mxu1 %vm120_vm0, %v3923_v31  ;;  %3427 = vmatpush3.msk.msra.mxu0 %vm5656_vm8, %v3690_v11  ;;  %vm5665_vm8 = vmmov %vm5664_vm1 }
  0xcb   :  { %3447 = vmatpush3.msk.msra.mxu1 %vm5657_vm2, %v3690_v11  ;;  %3428 = vmatprep.subr.msk.mxu0 %vm5658_vm13, %v3690_v11  ;;  %vm5667_vm2 = vcmp.eq.s32.totalorder %v3788_v13, %v4235_v41 }
  0xcc   :  { %3420 = vmatmul.mubr.msk.f32.gmra.mxu1 %vm120_vm0, %v3950_v33  ;;  %3448 = vmatprep.subr.msk.mxu1 %vm5659_vm7, %v3690_v11  ;;  %vm5670_vm7 = vcmp.eq.s32.totalorder %v3739_v1, %v4222_v40 }
  0xcd   :  { %3429 = vmatpush3.msk.msra.mxu0 %vm5660_vm14, %v3690_v11  ;;  %3449 = vmatpush3.msk.msra.mxu1 %vm5661_vm5, %v3690_v11  ;;  %vm5671_vm14 = vmmov %vm5670_vm7  ;;  %vm5672_vm5 = vcmp.eq.s32.totalorder %v3739_v1, %v4235_v41 }
  0xce   :  { %3430 = vmatprep.subr.msk.mxu0 %vm5662_vm10, %v3690_v11  ;;  %3450 = vmatprep.subr.msk.mxu1 %vm2262_vm9, %v3690_v11  ;;  %vm5673_vm10 = vcmp.eq.s32.totalorder %v3742_v2, %v4240_v42 }
  0xcf   :  { %3431 = vmatpush3.msk.msra.mxu0 %vm5663_vm6, %v3690_v11  ;;  %3451 = vmatpush3.msk.msra.mxu1 %vm2262_vm9, %v3690_v11  ;;  %vm5666_vm9 = vcmp.eq.s32.totalorder %v3799_v14, %v4222_v40  ;;  %vm5674_vm6 = vmmov %vm5672_vm5 }
  0xd0   :  { %3432 = vmatprep.subr.msk.mxu0 %vm2115_vm4, %v3690_v11  ;;  %3452 = vmatprep.subr.msk.mxu1 %vm5664_vm1, %v3690_v11  ;;  %vm5668_vm13 = vmmov %vm5666_vm9 }
  0xd1   :  { %3433 = vmatpush3.msk.msra.mxu0 %vm2115_vm4, %v3690_v11  ;;  %3453 = vmatpush3.msk.msra.mxu1 %vm5665_vm8, %v3690_v11  ;;  %vm5669_vm4 = vmmov %vm5667_vm2 }
  0xd2   :  { %3434 = vmatprep.subr.msk.mxu0 %vm5666_vm9, %v3690_v11  ;;  %3454 = vmatprep.subr.msk.mxu1 %vm5667_vm2, %v3690_v11  ;;  %vm5678_vm9 = vcmp.eq.s32.totalorder %v3749_v5, %v4240_v42 }
  0xd3   :  { %3435 = vmatpush3.msk.msra.mxu0 %vm5668_vm13, %v3690_v11  ;;  %3455 = vmatpush3.msk.msra.mxu1 %vm5669_vm4, %v3690_v11  ;;  %vm5679_vm2 = vmmov %vm5678_vm9  ;;  %vm5681_vm4 = vcmp.eq.s32.totalorder %v3765_v10, %v4240_v42 }
  0xd4   :  { %3436 = vmatprep.subr.msk.mxu0 %vm5670_vm7, %v3690_v11  ;;  %3456 = vmatprep.subr.msk.mxu1 %vm2259_vm3, %v3690_v11  ;;  %vm5680_vm13 = vmmov %vm5679_vm2 }
  0xd5   :  { %3437 = vmatpush3.msk.msra.mxu0 %vm5671_vm14, %v3690_v11  ;;  %3438 = vmatprep.mubr.msk.f32.mxu0 %vm120_vm0, %v3852_v23  ;;  %vm5683_vm7 = vmmov %vm5681_vm4 }
  0xd6   :  { %3457 = vmatpush3.msk.msra.mxu1 %vm2259_vm3, %v3690_v11  ;;  %3439 = vmatmul.mubr.msk.f32.vlgmr.msra.gmra.mxu0 %vm120_vm0, %v3859_v24  ;;  %vm5675_vm3 = vmmov %vm5673_vm10 }
  0xd7   :  { %3458 = vmatprep.subr.msk.mxu1 %vm5672_vm5, %v3690_v11  ;;  %3466 = vmatprep.subr.msk.mxu0 %vm5673_vm10, %v3690_v11  ;;  %vm5676_vm1 = vmmov %vm5675_vm3  ;;  %vm5686_vm10 = vcmp.eq.s32.totalorder %v3799_v14, %v4240_v42 }
  0xd8   :  { %3459 = vmatpush3.msk.msra.mxu1 %vm5674_vm6, %v3690_v11  ;;  %3460 = vmatprep.mubr.msk.f32.mxu1 %vm120_vm0, %v3852_v23  ;;  %vm5677_vm8 = vmmov %vm5676_vm1 }
  0xd9   :  { %3467 = vmatpush3.msk.msra.mxu0 %vm5675_vm3, %v3690_v11  ;;  %3461 = vmatmul.mubr.msk.f32.vlgmr.msra.gmra.mxu1 %vm120_vm0, %v3859_v24  ;;  %vm5684_vm14 = vmmov %vm5681_vm4  ;;  %vm5689_vm3 = vcmp.eq.s32.totalorder %v3739_v1, %v4240_v42 }
  0xda   :  { %3488 = vmatprep.subr.msk.mxu1 %vm5676_vm1, %v3690_v11  ;;  %3468 = vmatprep.subr.msk.mxu0 %vm2409_vm12, %v3690_v11  ;;  %vm5685_vm5 = vmmov %vm5681_vm4 }
  0xdb   :  { %3441 = vmatprep.mubr.msk.f32.mxu0 %vm120_vm0, %v3923_v31  ;;  %3496 = vmatpush3.msk.msra.mxu1 %vm5677_vm8, %v3690_v11  ;;  %vm5688_vm6 = vmmov %vm5686_vm10 }
  0xdc   :  { %3469 = vmatpush3.msk.msra.mxu0 %vm2409_vm12, %v3690_v11  ;;  %3489 = vmatprep.subr.msk.mxu1 %vm2409_vm12, %v3690_v11  ;;  %vm5690_vm1 = vmmov %vm5688_vm6 }
  0xdd   :  { %3442 = vmatmul.mubr.msk.f32.gmra.mxu0 %vm120_vm0, %v3950_v33  ;;  %3470 = vmatprep.subr.msk.mxu0 %vm5678_vm9, %v3690_v11  ;;  %vm5692_vm8 = vmmov %vm5689_vm3 }
  0xde   :  { %3463 = vmatprep.mubr.msk.f32.mxu1 %vm120_vm0, %v3923_v31  ;;  %3497 = vmatpush3.msk.msra.mxu1 %vm2409_vm12, %v3690_v11  ;;  %vm5682_vm12 = vmmov %vm5679_vm2 }
  0xdf   :  { %3471 = vmatpush3.msk.msra.mxu0 %vm5679_vm2, %v3690_v11  ;;  %3464 = vmatmul.mubr.msk.f32.gmra.mxu1 %vm120_vm0, %v3950_v33  ;;  %vm5693_vm9 = vmmov %vm5689_vm3 }
  0xe0   :  { %3490 = vmatprep.subr.msk.mxu1 %vm5680_vm13, %v3690_v11  ;;  %3472 = vmatprep.subr.msk.mxu0 %vm5681_vm4, %v3690_v11 }
  0xe1   :  { %3498 = vmatpush3.msk.msra.mxu1 %vm5682_vm12, %v3690_v11  ;;  %3473 = vmatpush3.msk.msra.mxu0 %vm5683_vm7, %v3690_v11 }
  0xe2   :  { %3491 = vmatprep.subr.msk.mxu1 %vm5684_vm14, %v3690_v11  ;;  %3474 = vmatprep.subr.msk.mxu0 %vm2406_vm11, %v3690_v11 }
  0xe3   :  { %3499 = vmatpush3.msk.msra.mxu1 %vm5685_vm5, %v3690_v11  ;;  %3475 = vmatpush3.msk.msra.mxu0 %vm2406_vm11, %v3690_v11 }
  0xe4   :  { %3492 = vmatprep.subr.msk.mxu1 %vm2406_vm11, %v3690_v11  ;;  %3476 = vmatprep.subr.msk.mxu0 %vm2405_vm15, %v3690_v11 }
  0xe5   :  { %3500 = vmatpush3.msk.msra.mxu1 %vm2406_vm11, %v3690_v11  ;;  %3477 = vmatpush3.msk.msra.mxu0 %vm2405_vm15, %v3690_v11  ;;  %vm5687_vm11 = vmmov %vm5686_vm10 }
  0xe6   :  { %3493 = vmatprep.subr.msk.mxu1 %vm2405_vm15, %v3690_v11  ;;  %3478 = vmatprep.subr.msk.mxu0 %vm5686_vm10, %v3690_v11 }
  0xe7   :  { %3501 = vmatpush3.msk.msra.mxu1 %vm2405_vm15, %v3690_v11  ;;  %3479 = vmatpush3.msk.msra.mxu0 %vm5687_vm11, %v3690_v11  ;;  %vm5691_vm15 = vmmov %vm5689_vm3 }
  0xe8   :  { %3494 = vmatprep.subr.msk.mxu1 %vm5688_vm6, %v3690_v11  ;;  %3480 = vmatprep.subr.msk.mxu0 %vm5689_vm3, %v3690_v11 }
  0xe9   :  { %3502 = vmatpush3.msk.msra.mxu1 %vm5690_vm1, %v3690_v11  ;;  %3481 = vmatpush3.msk.msra.mxu0 %vm5691_vm15, %v3690_v11 }
  0xea   :  { %3482 = vmatprep.mubr.msk.f32.mxu0 %vm120_vm0, %v3852_v23  ;;  %3495 = vmatprep.subr.msk.mxu1 %vm5692_vm8, %v3690_v11 }
  0xeb   :  { %3483 = vmatmul.mubr.msk.f32.vlgmr.msra.gmra.mxu0 %vm120_vm0, %v3859_v24  ;;  %3503 = vmatpush3.msk.msra.mxu1 %vm5693_vm9, %v3690_v11 }
  0xec   :  { %3485 = vmatprep.mubr.msk.f32.mxu1 %vm120_vm0, %v3923_v31 }
  0xed   :  { %3486 = vmatmul.mubr.msk.f32.vlgmr.msra.gmra.mxu1 %vm120_vm0, %v3950_v33 }
 0x10b   :  { %v5210_v45 = vpop.f32.mrf.mxu0 }
 0x10d   :  { %v5212_v46 = vpop.f32.mrf.mxu0  ;;  %v3154_v47 = vpop.f32.mrf.mxu1 }
 0x10e   :  { %v344_v62 = vmul.f32 %v3154_v47, %v5210_v45 }
 0x10f   :  { %v324_v49 = vpop.f32.mrf.mxu1 }
 0x110   :  { %v343_v61 = vmul.f32 %v324_v49, %v5212_v46 }
 0x112   :  { %v347_v3 = vadd.f32 %v344_v62, %v343_v61 }
 0x113   :  { %v5214_v48 = vpop.f32.mrf.mxu0  ;;  %v3157_v51 = vpop.f32.mrf.mxu1 }
 0x114   :  { %v346_v5 = vmul.f32 %v3157_v51, %v5214_v48 }
 0x115   :  { %v5216_v50 = vpop.f32.mrf.mxu0  ;;  %v334_v53 = vpop.f32.mrf.mxu1 }
 0x116   :  { %v345_v63 = vmul.f32 %v334_v53, %v5216_v50 }
 0x118   :  { %v348_v6 = vadd.f32 %v347_v3, %v345_v63 }
 0x11a   :  { %v349_v9 = vadd.f32 %v348_v6, %v346_v5 }
 0x11c   :  { %v350_v16 = vrot.slane %v349_v9, 4 }
 0x11e   :  { %v3176_v52 = vpop.f32.mrf.mxu0  ;;  %v351_v22 = vadd.f32 %v350_v16, %v349_v9 }
 0x11f   :  { %v488_v12 = vmul.f32 %v3176_v52, %v5210_v45 }
 0x120   :  { %v468_v54 = vpop.f32.mrf.mxu0  ;;  %v352_v30 = vrot.slane %v351_v22, 2 }
 0x121   :  { %v3198_v55 = vpop.f32.mrf.mxu1  ;;  %v487_v10 = vmul.f32 %v468_v54, %v5212_v46 }
 0x122   :  { %v632_v23 = vmul.f32 %v3198_v55, %v5210_v45  ;;  %v353_v36 = vadd.f32 %v352_v30, %v351_v22 }
 0x123   :  { %v612_v57 = vpop.f32.mrf.mxu1  ;;  %v491_v17 = vadd.f32 %v488_v12, %v487_v10 }
 0x124   :  { %v3179_v56 = vpop.f32.mrf.mxu0  ;;  %v631_v18 = vmul.f32 %v612_v57, %v5212_v46  ;;  %v354_v41 = vrot.slane %v353_v36, 1 }
 0x125   :  { %v490_v24 = vmul.f32 %v3179_v56, %v5214_v48 }
 0x126   :  { %v478_v58 = vpop.f32.mrf.mxu0  ;;  %v635_v27 = vadd.f32 %v632_v23, %v631_v18  ;;  %v5233_v52 = vadd.f32 %v354_v41, %v353_v36 }
 0x127   :  { %v489_v13 = vmul.f32 %v478_v58, %v5216_v50 }
 0x128   :  { %v3201_v59 = vpop.f32.mrf.mxu1 }
 0x129   :  { %v492_v19 = vadd.f32 %v491_v17, %v489_v13  ;;  %v634_v34 = vmul.f32 %v3201_v59, %v5214_v48 }
 0x12a   :  { %v622_v1 = vpop.f32.mrf.mxu1 }
 0x12b   :  { %v633_v25 = vmul.f32 %v622_v1, %v5216_v50  ;;  %v493_v28 = vadd.f32 %v492_v19, %v490_v24 }
 0x12d   :  { %v636_v31 = vadd.f32 %v635_v27, %v633_v25  ;;  %v494_v33 = vrot.slane %v493_v28, 4 }
 0x12f   :  { %v637_v37 = vadd.f32 %v636_v31, %v634_v34  ;;  %v495_v40 = vadd.f32 %v494_v33, %v493_v28 }
 0x131   :  { %v638_v42 = vrot.slane %v637_v37, 4  ;;  %v496_v47 = vrot.slane %v495_v40, 2 }
 0x132   :  { %v3220_v60 = vpop.f32.mrf.mxu0 }
 0x133   :  { %v639_v53 = vadd.f32 %v638_v42, %v637_v37  ;;  %v776_v54 = vmul.f32 %v3220_v60, %v5210_v45  ;;  %v497_v58 = vadd.f32 %v496_v47, %v495_v40 }
 0x134   :  { %v756_v2 = vpop.f32.mrf.mxu0 }
 0x135   :  { %v3242_v4 = vpop.f32.mrf.mxu1  ;;  %v775_v49 = vmul.f32 %v756_v2, %v5212_v46  ;;  %v358_v2 = vand.u32 2147483647, %v5233_v52  ;;  %v640_v3 = vrot.slane %v639_v53, 2 }
 0x136   :  { %v920_v61 = vmul.f32 %v3242_v4, %v5210_v45 }
 0x137   :  { %v900_v8 = vpop.f32.mrf.mxu1  ;;  %v779_v59 = vadd.f32 %v776_v54, %v775_v49  ;;  %v641_v23 = vadd.f32 %v640_v3, %v639_v53 }
 0x138   :  { %v3223_v7 = vpop.f32.mrf.mxu0  ;;  %v919_v56 = vmul.f32 %v900_v8, %v5212_v46 }
 0x139   :  { %v778_v4 = vmul.f32 %v3223_v7, %v5214_v48  ;;  %v642_v40 = vrot.slane %v641_v23, 1 }
 0x13a   :  { %v766_v11 = vpop.f32.mrf.mxu0  ;;  %v923_v6 = vadd.f32 %v920_v61, %v919_v56 }
 0x13b   :  { %v777_v55 = vmul.f32 %v766_v11, %v5216_v50  ;;  %v498_v11 = vrot.slane %v497_v58, 1 }
 0x13c   :  { %v5225_v14 = vpop.f32.mrf.mxu1 }
 0x13d   :  { %v780_v5 = vadd.f32 %v779_v59, %v777_v55  ;;  %v922_v24 = vmul.f32 %v5225_v14, %v5214_v48  ;;  %v5253_v27 = vadd.f32 %v498_v11, %v497_v58 }
 0x13e   :  { %v910_v20 = vpop.f32.mrf.mxu1 }
 0x13f   :  { %v921_v62 = vmul.f32 %v910_v20, %v5216_v50  ;;  %v359_v20 = vsub.f32 0.0, %v358_v2 }
 0x141   :  { %v924_v13 = vadd.f32 %v923_v6, %v921_v62 }
 0x146   :  { %v3264_v15 = vpop.f32.mrf.mxu0 }
 0x147   :  { %v1064_v60 = vmul.f32 %v3264_v15, %v5210_v45 }
 0x148   :  { %v1044_v21 = vpop.f32.mrf.mxu0 }
 0x149   :  { %v3286_v26 = vpop.f32.mrf.mxu1  ;;  %v1063_v63 = vmul.f32 %v1044_v21, %v5212_v46  ;;  %v781_v21 = vadd.f32 %v780_v5, %v778_v4 }
 0x14a   :  { %v1208_v17 = vmul.f32 %v3286_v26, %v5210_v45  ;;  %v925_v26 = vadd.f32 %v924_v13, %v922_v24 }
 0x14b   :  { %v1188_v32 = vpop.f32.mrf.mxu1  ;;  %v1067_v16 = vadd.f32 %v1064_v60, %v1063_v63  ;;  %v782_v34 = vrot.slane %v781_v21, 4 }
 0x14c   :  { %v3267_v29 = vpop.f32.mrf.mxu0  ;;  %v1207_v9 = vmul.f32 %v1188_v32, %v5212_v46  ;;  %v926_v49 = vrot.slane %v925_v26, 4 }
 0x14d   :  { %v1066_v31 = vmul.f32 %v3267_v29, %v5214_v48  ;;  %v783_v55 = vadd.f32 %v782_v34, %v781_v21 }
 0x14e   :  { %v1054_v35 = vpop.f32.mrf.mxu0  ;;  %v1211_v7 = vadd.f32 %v1208_v17, %v1207_v9  ;;  %v927_v2 = vadd.f32 %v926_v49, %v925_v26 }
 0x14f   :  { %v1065_v8 = vmul.f32 %v1054_v35, %v5216_v50  ;;  %v784_v60 = vrot.slane %v783_v55, 2 }
 0x150   :  { %v3289_v38 = vpop.f32.mrf.mxu1  ;;  %v928_v17 = vrot.slane %v927_v2, 2 }
 0x151   :  { %v1068_v25 = vadd.f32 %v1067_v16, %v1065_v8  ;;  %v1210_v14 = vmul.f32 %v3289_v38, %v5214_v48  ;;  %v785_v21 = vadd.f32 %v784_v60, %v783_v55 }
 0x152   :  { %v1198_v43 = vpop.f32.mrf.mxu1 }
 0x153   :  { %v1209_v18 = vmul.f32 %v1198_v43, %v5216_v50  ;;  %v1069_v41 = vadd.f32 %v1068_v25, %v1066_v31  ;;  %v502_v43 = vand.u32 2147483647, %v5253_v27  ;;  %v786_v31 = vrot.slane %v785_v21, 1 }
 0x155   :  { %v1212_v32 = vadd.f32 %v1211_v7, %v1209_v18  ;;  %v1070_v61 = vrot.slane %v1069_v41, 4  ;;  %v503_v63 = vsub.f32 0.0, %v502_v43 }
 0x157   :  { %v1213_v53 = vadd.f32 %v1212_v32, %v1210_v14 }
 0x159   :  { %v1214_v3 = vrot.slane %v1213_v53, 4 }
 0x15a   :  { %v3308_v39 = vpop.f32.mrf.mxu0 }
 0x15b   :  { %v1353_v15 = vmul.f32 %v3308_v39, %v5210_v45  ;;  %v360_v39 = vmul.f32 1.442695, %v359_v20  ;;  %v1215_v18 = vadd.f32 %v1214_v3, %v1213_v53 }
 0x15c   :  { %v1333_v44 = vpop.f32.mrf.mxu0 }
 0x15d   :  { %v3330_v51 = vpop.f32.mrf.mxu1  ;;  %v1352_v12 = vmul.f32 %v1333_v44, %v5212_v46  ;;  %3512 = vpow2.f32 %v360_v39  ;;  %v1216_v26 = vrot.slane %v1215_v18, 2 }
 0x15e   :  { %v1498_v44 = vmul.f32 %v3330_v51, %v5210_v45 }
 0x15f   :  { %v1478_v1 = vpop.f32.mrf.mxu1  ;;  %v1356_v28 = vadd.f32 %v1353_v15, %v1352_v12  ;;  %v504_v12 = vmul.f32 1.442695, %v503_v63 }
 0x160   :  { %v3311_v57 = vpop.f32.mrf.mxu0  ;;  %v1497_v35 = vmul.f32 %v1478_v1, %v5212_v46  ;;  %v5264_v1 = vadd.f32 %v642_v40, %v641_v23 }
 0x161   :  { %v1355_v47 = vmul.f32 %v3311_v57, %v5214_v48  ;;  %3514 = vpow2.f32 %v504_v12 }
 0x162   :  { %v1343_v10 = vpop.f32.mrf.mxu0  ;;  %v1501_v56 = vadd.f32 %v1498_v44, %v1497_v35  ;;  %v646_v16 = vand.u32 2147483647, %v5264_v1 }
 0x163   :  { %v1354_v22 = vmul.f32 %v1343_v10, %v5216_v50  ;;  %v1071_v10 = vadd.f32 %v1070_v61, %v1069_v41 }
 0x164   :  { %v3333_v19 = vpop.f32.mrf.mxu1 }
 0x165   :  { %v1357_v36 = vadd.f32 %v1356_v28, %v1354_v22  ;;  %v1500_v8 = vmul.f32 %v3333_v19, %v5214_v48  ;;  %v1072_v23 = vrot.slane %v1071_v10, 2  ;;  %v647_v28 = vsub.f32 0.0, %v646_v16 }
 0x166   :  { %v1488_v33 = vpop.f32.mrf.mxu1 }
 0x167   :  { %v1499_v29 = vmul.f32 %v1488_v33, %v5216_v50  ;;  %v1358_v58 = vadd.f32 %v1357_v36, %v1355_v47  ;;  %v1073_v35 = vadd.f32 %v1072_v23, %v1071_v10  ;;  %v648_v43 = vmul.f32 1.442695, %v647_v28 }
 0x168   :  { %v5276_v47 = vadd.f32 %v786_v31, %v785_v21 }
 0x169   :  { %v1502_v51 = vadd.f32 %v1501_v56, %v1499_v29  ;;  %v1359_v9 = vrot.slane %v1358_v58, 4  ;;  %3516 = vpow2.f32 %v648_v43 }
 0x16a   :  { %v5274_v14 = vpop.eup %3512  ;;  %v790_v63 = vand.u32 2147483647, %v5276_v47 }
 0x16b   :  { %v1503_v13 = vadd.f32 %v1502_v51, %v1500_v8  ;;  %v1360_v15 = vadd.f32 %v1359_v9, %v1358_v58 }
 0x16c   :  { %v791_v16 = vsub.f32 0.0, %v790_v63 }
 0x16d   :  { %v1504_v19 = vrot.slane %v1503_v13, 4  ;;  %v1361_v32 = vrot.slane %v1360_v15, 2 }
 0x16e   :  { %v3352_v30 = vpop.f32.mrf.mxu0  ;;  %v5286_v10 = vpop.eup %3514 }
 0x16f   :  { %v1643_v38 = vmul.f32 %v3352_v30, %v5210_v45  ;;  %v929_v30 = vadd.f32 %v928_v17, %v927_v2  ;;  %v1362_v29 = vadd.f32 %v1361_v32, %v1360_v15  ;;  %v365_v32 = vmul.f32 -0.5, %v5274_v14 }
 0x170   :  { %v1623_v37 = vpop.f32.mrf.mxu0 }
 0x171   :  { %v3374_v42 = vpop.f32.mrf.mxu1  ;;  %v1642_v54 = vmul.f32 %v1623_v37, %v5212_v46  ;;  %v1505_v37 = vadd.f32 %v1504_v19, %v1503_v13  ;;  %v930_v44 = vrot.slane %v929_v30, 1  ;;  %v1363_v51 = vrot.slane %v1362_v29, 1 }
 0x172   :  { %v1788_v25 = vmul.f32 %v3374_v42, %v5210_v45  ;;  %v1217_v42 = vadd.f32 %v1216_v26, %v1215_v18 }
 0x173   :  { %v1768_v62 = vpop.f32.mrf.mxu1  ;;  %v1646_v5 = vadd.f32 %v1643_v38, %v1642_v54  ;;  %v1074_v54 = vrot.slane %v1073_v35, 1  ;;  %v1506_v56 = vrot.slane %v1505_v37, 2  ;;  %v5279_v61 = vadd.f32 %v930_v44, %v929_v30 }
 0x174   :  { %v3355_v59 = vpop.f32.mrf.mxu0  ;;  %v1787_v22 = vmul.f32 %v1768_v62, %v5212_v46  ;;  %v1218_v38 = vrot.slane %v1217_v42, 1  ;;  %v5292_v17 = vadd.f32 %v1363_v51, %v1362_v29  ;;  %v792_v30 = vmul.f32 1.442695, %v791_v16 }
 0x175   :  { %v1645_v20 = vmul.f32 %v3355_v59, %v5214_v48  ;;  %v362_v59 = vadd.f32 1.0, %v5274_v14  ;;  %v5282_v2 = vadd.f32 %v1074_v54, %v1073_v35  ;;  %v1507_v60 = vadd.f32 %v1506_v56, %v1505_v37 }
 0x176   :  { %v1633_v57 = vpop.f32.mrf.mxu0  ;;  %v1791_v33 = vadd.f32 %v1788_v25, %v1787_v22  ;;  %v5290_v12 = vadd.f32 %v1218_v38, %v1217_v42  ;;  %v506_v22 = vadd.f32 1.0, %v5286_v10  ;;  %v1365_v26 = vsub.f32 0.0, %v5292_v17  ;;  %v5312_v42 = vpop.eup %3516 }
 0x177   :  { %v1644_v6 = vmul.f32 %v1633_v57, %v5216_v50  ;;  %3518 = vlog2.f32 %v362_v59  ;;  %v1508_v23 = vrot.slane %v1507_v60, 1  ;;  %v644_v54 = vsub.f32 0.0, %v5264_v1 }
 0x178   :  { %v3377_v4 = vpop.f32.mrf.mxu1  ;;  %v1220_v19 = vsub.f32 0.0, %v5290_v12  ;;  %3520 = vlog2.f32 %v506_v22  ;;  %v1368_v29 = vand.u32 2147483647, %v1365_v26 }
 0x179   :  { %v1647_v11 = vadd.f32 %v1646_v5, %v1644_v6  ;;  %v1790_v39 = vmul.f32 %v3377_v4, %v5214_v48  ;;  %v356_v6 = vsub.f32 0.0, %v5233_v52  ;;  %v934_v4 = vand.u32 2147483647, %v5279_v61 }
 0x17a   :  { %v1778_v7 = vpop.f32.mrf.mxu1  ;;  %v1223_v43 = vand.u32 2147483647, %v1220_v19  ;;  %3522 = vpow2.f32 %v792_v30 }
 0x17b   :  { %v1648_v24 = vadd.f32 %v1647_v11, %v1645_v20  ;;  %v1789_v34 = vmul.f32 %v1778_v7, %v5216_v50  ;;  %v500_v11 = vsub.f32 0.0, %v5253_v27  ;;  %v1078_v20 = vand.u32 2147483647, %v5282_v2 }
 0x17c   :  { %v935_v7 = vsub.f32 0.0, %v934_v4  ;;  %v788_v4 = vsub.f32 0.0, %v5276_v47 }
 0x17d   :  { %v1649_v36 = vrot.slane %v1648_v24, 4  ;;  %v1792_v40 = vadd.f32 %v1791_v33, %v1789_v34  ;;  %v5301_v28 = vmax.f32 %v500_v11, 0.0  ;;  %v1079_v33 = vsub.f32 0.0, %v1078_v20 }
 0x17f   :  { %v1793_v49 = vadd.f32 %v1792_v40, %v1790_v39  ;;  %v1650_v55 = vadd.f32 %v1649_v36, %v1648_v24  ;;  %v5298_v24 = vmax.f32 %v356_v6, 0.0  ;;  %v5305_v36 = vadd.f32 %v1508_v23, %v1507_v60 }
 0x180   :  { %v368_v40 = vand.u32 2147483647, %v5274_v14  ;;  %v1224_v6 = vsub.f32 0.0, %v1223_v43  ;;  %v1369_v60 = vsub.f32 0.0, %v1368_v29 }
 0x181   :  { %v1794_v58 = vrot.slane %v1793_v49, 4  ;;  %v1651_v3 = vrot.slane %v1650_v55, 2  ;;  %v1510_v59 = vsub.f32 0.0, %v5305_v36 }
 0x182   :  { %v3396_v41 = vpop.f32.mrf.mxu0  ;;  %vm5324_vm0 = vcmp.lt.f32.partialorder %v368_v40, 0.0004427343  ;;  %v1225_v23 = vmul.f32 1.442695, %v1224_v6  ;;  %v512_v40 = vand.u32 2147483647, %v5286_v10 }
 0x183   :  { %v1795_v5 = vadd.f32 %v1794_v58, %v1793_v49  ;;  %v1933_v18 = vmul.f32 %v3396_v41, %v5210_v45  ;;  %v1652_v21 = vadd.f32 %v1651_v3, %v1650_v55  ;;  %v936_v41 = vmul.f32 1.442695, %v935_v7 }
 0x184   :  { %v1913_v53 = vpop.f32.mrf.mxu0  ;;  %v1080_v55 = vmul.f32 1.442695, %v1079_v33  ;;  %v366_v3 = vadd.f32 1.0, %v365_v32  ;;  %v1513_v20 = vand.u32 2147483647, %v1510_v59  ;;  %v509_v7 = vmul.f32 -0.5, %v5286_v10 }
 0x185   :  { %v3418_v62 = vpop.f32.mrf.mxu1  ;;  %v1932_v9 = vmul.f32 %v1913_v53, %v5212_v46  ;;  %v1796_v15 = vrot.slane %v1795_v5, 2  ;;  %v1653_v34 = vrot.slane %v1652_v21, 1  ;;  %3524 = vpow2.f32 %v936_v41 }
 0x186   :  { %v2078_v49 = vmul.f32 %v3418_v62, %v5210_v45  ;;  %v3519_v62 = vpop.eup %3518  ;;  %3526 = vpow2.f32 %v1080_v55  ;;  %v1514_v41 = vsub.f32 0.0, %v1513_v20  ;;  %v510_v55 = vadd.f32 1.0, %v509_v7 }
 0x187   :  { %v2058_v13 = vpop.f32.mrf.mxu1  ;;  %v1936_v27 = vadd.f32 %v1933_v18, %v1932_v9  ;;  %v1797_v35 = vadd.f32 %v1796_v15, %v1795_v5  ;;  %v5318_v56 = vadd.f32 %v1653_v34, %v1652_v21  ;;  %v650_v5 = vadd.f32 1.0, %v5312_v42 }
 0x188   :  { %v3399_v57 = vpop.f32.mrf.mxu0  ;;  %v2077_v39 = vmul.f32 %v2058_v13, %v5212_v46  ;;  %v364_v22 = vmul.f32 0.6931472, %v3519_v62  ;;  %v367_v34 = vmul.f32 %v5274_v14, %v366_v3  ;;  %vm5354_vm2 = vcmp.lt.f32.partialorder %v512_v40, 0.0004427343 }
 0x189   :  { %v1935_v37 = vmul.f32 %v3399_v57, %v5214_v48  ;;  %v1798_v58 = vrot.slane %v1797_v35, 1  ;;  %v1655_v13 = vsub.f32 0.0, %v5318_v56  ;;  %3528 = vlog2.f32 %v650_v5 }
 0x18a   :  { %v1923_v8 = vpop.f32.mrf.mxu0  ;;  %v2081_v38 = vadd.f32 %v2078_v49, %v2077_v39  ;;  %v3521_v49 = vpop.eup %3520  ;;  %3530 = vpow2.f32 %v1225_v23 }
 0x18b   :  { %v1934_v52 = vmul.f32 %v1923_v8, %v5216_v50  ;;  %v5329_v16 = vadd.f32 %v1798_v58, %v1797_v35  ;;  %v1658_v35 = vand.u32 2147483647, %v1655_v13  ;;  %v508_v62 = vmul.f32 0.6931472, %v3521_v49 }
 0x18c   :  { %v3421_v25 = vpop.f32.mrf.mxu1 }
 0x18d   :  { %v1937_v31 = vadd.f32 %v1936_v27, %v1934_v52  ;;  %v2080_v1 = vmul.f32 %v3421_v25, %v5214_v48  ;;  %v5331_v52 = vmax.f32 %v644_v54, 0.0  ;;  %v1370_v25 = vmul.f32 1.442695, %v1369_v60 }
 0x18e   :  { %v2068_v44 = vpop.f32.mrf.mxu1  ;;  %v1515_v60 = vmul.f32 1.442695, %v1514_v41 }
 0x18f   :  { %v1938_v53 = vadd.f32 %v1937_v31, %v1935_v37  ;;  %v2079_v51 = vmul.f32 %v2068_v44, %v5216_v50  ;;  %v1800_v37 = vsub.f32 0.0, %v5329_v16  ;;  %3532 = vpow2.f32 %v1370_v25 }
 0x190   :  { %3534 = vpow2.f32 %v1515_v60 }
 0x191   :  { %v1939_v63 = vrot.slane %v1938_v53, 4  ;;  %v2082_v8 = vadd.f32 %v2081_v38, %v2079_v51  ;;  %v5348_v51 = vpop.eup %3522  ;;  %v1803_v3 = vand.u32 2147483647, %v1800_v37 }
 0x193   :  { %v1940_v9 = vadd.f32 %v1939_v63, %v1938_v53  ;;  %v2083_v15 = vadd.f32 %v2082_v8, %v2080_v1  ;;  %v370_v53 = vsel %vm5324_vm0, %v367_v34, %v364_v22  ;;  %v794_v22 = vadd.f32 1.0, %v5348_v51 }
 0x194   :  { %v5368_v25 = vadd.f32 %v370_v53, %v5298_v24 }
 0x195   :  { %v1941_v21 = vrot.slane %v1940_v9, 2  ;;  %v2084_v31 = vrot.slane %v2083_v15, 4  ;;  %3536 = vlog2.f32 %v794_v22 }
 0x196   :  { %v3440_v57 = vpop.f32.mrf.mxu0 }
 0x197   :  { %v1942_v30 = vadd.f32 %v1941_v21, %v1940_v9  ;;  %v2223_v39 = vmul.f32 %v3440_v57, %v5210_v45  ;;  %v2085_v44 = vadd.f32 %v2084_v31, %v2083_v15  ;;  %v1659_v57 = vsub.f32 0.0, %v1658_v35  ;;  %v5360_v21 = vpop.eup %3524 }
 0x198   :  { %v2203_v11 = vpop.f32.mrf.mxu0  ;;  %v511_v15 = vmul.f32 %v5286_v10, %v510_v55  ;;  %v5371_v34 = vpop.eup %3526 }
 0x199   :  { %v3462_v18 = vpop.f32.mrf.mxu1  ;;  %v2222_v27 = vmul.f32 %v2203_v11, %v5212_v46  ;;  %v1943_v43 = vrot.slane %v1942_v30, 1  ;;  %v2086_v38 = vrot.slane %v2085_v44, 2  ;;  %v653_v11 = vmul.f32 -0.5, %v5312_v42 }
 0x19a   :  { %v1660_v31 = vmul.f32 1.442695, %v1659_v57  ;;  %v514_v10 = vsel %vm5354_vm2, %v511_v15, %v508_v62 }
 0x19b   :  { %v2348_v33 = vpop.f32.mrf.mxu1  ;;  %v2226_v54 = vadd.f32 %v2223_v39, %v2222_v27  ;;  %v5346_v58 = vadd.f32 %v1943_v43, %v1942_v30  ;;  %v2087_v1 = vadd.f32 %v2086_v38, %v2085_v44  ;;  %v656_v30 = vand.u32 2147483647, %v5312_v42  ;;  %v3529_v43 = vpop.eup %3528 }
 0x19c   :  { %v2367_v27 = vmul.f32 %v2348_v33, %v5212_v46  ;;  %v2368_v39 = vmul.f32 %v3462_v18, %v5210_v45  ;;  %v654_v40 = vadd.f32 1.0, %v653_v11  ;;  %v938_v33 = vadd.f32 1.0, %v5360_v21 }
 0x19d   :  { %v3443_v32 = vpop.f32.mrf.mxu0  ;;  %v1945_v9 = vsub.f32 0.0, %v5346_v58  ;;  %v2088_v35 = vrot.slane %v2087_v1, 1  ;;  %v515_v53 = vadd.f32 %v514_v10, %v5301_v28  ;;  %3538 = vpow2.f32 %v1660_v31  ;;  %v5389_v28 = vpop.eup %3530 }
 0x19e   :  { %v2225_v5 = vmul.f32 %v3443_v32, %v5214_v48  ;;  %v1804_v32 = vsub.f32 0.0, %v1803_v3  ;;  %v2371_v49 = vadd.f32 %v2368_v39, %v2367_v27  ;;  %vm5385_vm13 = vcmp.lt.f32.partialorder %v656_v30, 0.0004427343  ;;  %v5393_v15 = vpop.eup %3532 }
 0x19f   :  { %v2213_v29 = vpop.f32.mrf.mxu0  ;;  %v3465_v63 = vpop.f32.mrf.mxu1  ;;  %v1948_v23 = vand.u32 2147483647, %v1945_v9  ;;  %3540 = vlog2.f32 %v938_v33  ;;  %v516_v22 = vsub.f32 0.0, %v515_v53  ;;  %v1227_v10 = vadd.f32 1.0, %v5389_v28 }
 0x1a0   :  { %v2224_v14 = vmul.f32 %v2213_v29, %v5216_v50  ;;  %v5378_v29 = vadd.f32 %v2088_v35, %v2087_v1  ;;  %v2370_v38 = vmul.f32 %v3465_v63, %v5214_v48 }
 0x1a1   :  { %v2358_v7 = vpop.f32.mrf.mxu1  ;;  %v1949_v44 = vsub.f32 0.0, %v1948_v23 }
 0x1a2   :  { %v2227_v6 = vadd.f32 %v2226_v54, %v2224_v14  ;;  %v2369_v24 = vmul.f32 %v2358_v7, %v5216_v50  ;;  %v1082_v54 = vadd.f32 1.0, %v5371_v34  ;;  %v1805_v14 = vmul.f32 1.442695, %v1804_v32 }
 0x1a3   :  { %v2090_v18 = vsub.f32 0.0, %v5378_v29  ;;  %v1950_v60 = vmul.f32 1.442695, %v1949_v44  ;;  %v372_v44 = vsub.f32 0.0, %v5368_v25 }
 0x1a4   :  { %v2228_v20 = vadd.f32 %v2227_v6, %v2225_v5  ;;  %v2372_v57 = vadd.f32 %v2371_v49, %v2369_v24  ;;  %v652_v5 = vmul.f32 0.6931472, %v3529_v43  ;;  %v655_v6 = vmul.f32 %v5312_v42, %v654_v40 }
 0x1a5   :  { %v2093_v1 = vand.u32 2147483647, %v2090_v18  ;;  %3542 = vlog2.f32 %v1082_v54 }
 0x1a6   :  { %v2229_v41 = vrot.slane %v2228_v20, 4  ;;  %v2373_v11 = vadd.f32 %v2372_v57, %v2370_v38  ;;  %3544 = vpow2.f32 %v1805_v14  ;;  %v658_v32 = vsel %vm5385_vm13, %v655_v6, %v652_v5  ;;  %v5408_v14 = vpop.eup %3534 }
 0x1a7   :  { %v2094_v27 = vsub.f32 0.0, %v2093_v1  ;;  %3546 = vpow2.f32 %v1950_v60  ;;  %v659_v49 = vadd.f32 %v658_v32, %v5331_v52  ;;  %v517_v57 = vadd.f32 %v516_v22, %v372_v44  ;;  %v3537_v5 = vpop.eup %3536 }
 0x1a8   :  { %v2230_v55 = vadd.f32 %v2229_v41, %v2228_v20  ;;  %v2374_v30 = vrot.slane %v2373_v11, 4  ;;  %3548 = vlog2.f32 %v1227_v10  ;;  %v1076_v52 = vsub.f32 0.0, %v5282_v2 }
 0x1a9   :  { %v2095_v40 = vmul.f32 1.442695, %v2094_v27  ;;  %v660_v60 = vsub.f32 0.0, %v659_v49  ;;  %v1517_v1 = vadd.f32 1.0, %v5408_v14 }
 0x1aa   :  { %v2231_v8 = vrot.slane %v2230_v55, 2  ;;  %v2375_v41 = vadd.f32 %v2374_v30, %v2373_v11  ;;  %v5414_v62 = vpop.eup %3538  ;;  %v789_v11 = vmax.f32 %v788_v4, 0.0 }
 0x1ab   :  { %v3484_v3 = vpop.f32.mrf.mxu0  ;;  %3550 = vpow2.f32 %v2095_v40  ;;  %v5431_v10 = vadd.f32 %v660_v60, %v517_v57 }
 0x1ac   :  { %v2513_v42 = vmul.f32 %v3484_v3, %v5210_v45  ;;  %v2232_v7 = vadd.f32 %v2231_v8, %v2230_v55  ;;  %v797_v45 = vmul.f32 -0.5, %v5348_v51  ;;  %v2376_v54 = vrot.slane %v2375_v41, 2  ;;  %v3541_v2 = vpop.eup %3540 }
 0x1ad   :  { %v2493_v20 = vpop.f32.mrf.mxu0  ;;  %v3487_v63 = vpop.f32.mrf.mxu1  ;;  %v932_v55 = vsub.f32 0.0, %v5279_v61 }
 0x1ae   :  { %v2512_v23 = vmul.f32 %v2493_v20, %v5212_v46  ;;  %v2233_v33 = vrot.slane %v2232_v7, 1  ;;  %v1372_v46 = vadd.f32 1.0, %v5393_v15  ;;  %v2515_v24 = vmul.f32 %v3487_v63, %v5214_v48 }
 0x1af   :  { %v2503_v31 = vpop.f32.mrf.mxu1  ;;  %v2377_v3 = vadd.f32 %v2376_v54, %v2375_v41  ;;  %v798_v25 = vadd.f32 1.0, %v797_v45  ;;  %v941_v20 = vmul.f32 -0.5, %v5360_v21  ;;  %v944_v63 = vand.u32 2147483647, %v5360_v21 }
 0x1b0   :  { %v2516_v35 = vadd.f32 %v2513_v42, %v2512_v23  ;;  %v2514_v39 = vmul.f32 %v2503_v31, %v5216_v50  ;;  %v5406_v53 = vadd.f32 %v2233_v33, %v2232_v7  ;;  %v800_v50 = vand.u32 2147483647, %v5348_v51 }
 0x1b1   :  { %3552 = vlog2.f32 %v1372_v46  ;;  %v2378_v8 = vrot.slane %v2377_v3, 1  ;;  %v796_v42 = vmul.f32 0.6931472, %v3537_v5  ;;  %v933_v27 = vmax.f32 %v932_v55, 0.0 }
 0x1b2   :  { %v2517_v43 = vadd.f32 %v2516_v35, %v2514_v39  ;;  %v2235_v48 = vsub.f32 0.0, %v5406_v53  ;;  %vm5423_vm4 = vcmp.lt.f32.partialorder %v800_v50, 0.0004427343  ;;  %v1085_v7 = vmul.f32 -0.5, %v5371_v34  ;;  %v3543_v4 = vpop.eup %3542 }
 0x1b3   :  { %v799_v30 = vmul.f32 %v5348_v51, %v798_v25  ;;  %v1077_v31 = vmax.f32 %v1076_v52, 0.0  ;;  %v5429_v47 = vadd.f32 %v2378_v8, %v2377_v3  ;;  %3554 = vlog2.f32 %v1517_v1  ;;  %v5434_v40 = vpop.eup %3544 }
 0x1b4   :  { %v2518_v38 = vadd.f32 %v2517_v43, %v2515_v24  ;;  %v2238_v61 = vand.u32 2147483647, %v2235_v48  ;;  %v1662_v35 = vadd.f32 1.0, %v5414_v62  ;;  %v942_v33 = vadd.f32 1.0, %v941_v20  ;;  %v5443_v49 = vpop.eup %3546 }
 0x1b5   :  { %vm5436_vm12 = vcmp.lt.f32.partialorder %v944_v63, 0.0004427343  ;;  %v2380_v51 = vsub.f32 0.0, %v5429_v47  ;;  %v802_v46 = vsel %vm5423_vm4, %v799_v30, %v796_v42  ;;  %v940_v24 = vmul.f32 0.6931472, %v3541_v2  ;;  %v3549_v60 = vpop.eup %3548 }
 0x1b6   :  { %v2519_v6 = vrot.slane %v2518_v38, 4  ;;  %v2239_v32 = vsub.f32 0.0, %v2238_v61  ;;  %v1086_v43 = vadd.f32 1.0, %v1085_v7  ;;  %v1088_v54 = vand.u32 2147483647, %v5371_v34 }
 0x1b7   :  { %v1230_v50 = vmul.f32 -0.5, %v5389_v28  ;;  %v2383_v55 = vand.u32 2147483647, %v2380_v51  ;;  %v1807_v57 = vadd.f32 1.0, %v5434_v40  ;;  %v943_v5 = vmul.f32 %v5360_v21, %v942_v33 }
 0x1b8   :  { %v2520_v22 = vadd.f32 %v2519_v6, %v2518_v38  ;;  %v2240_v45 = vmul.f32 1.442695, %v2239_v32  ;;  %v1084_v38 = vmul.f32 0.6931472, %v3543_v4  ;;  %v1221_v25 = vsub.f32 0.0, %v1220_v19  ;;  %v5458_v63 = vpop.eup %3550 }
 0x1b9   :  { %v1375_v52 = vmul.f32 -0.5, %v5393_v15  ;;  %v2384_v6 = vsub.f32 0.0, %v2383_v55  ;;  %v803_v1 = vadd.f32 %v802_v46, %v789_v11  ;;  %v1087_v61 = vmul.f32 %v5371_v34, %v1086_v43 }
 0x1ba   :  { %v2521_v39 = vrot.slane %v2520_v22, 2  ;;  %3556 = vpow2.f32 %v2240_v45  ;;  %v1952_v8 = vadd.f32 1.0, %v5443_v49  ;;  %vm5462_vm7 = vcmp.lt.f32.partialorder %v1088_v54, 0.0004427343 }
 0x1bb   :  { %3558 = vlog2.f32 %v1662_v35  ;;  %v1231_v12 = vadd.f32 1.0, %v1230_v50  ;;  %v2385_v19 = vmul.f32 1.442695, %v2384_v6  ;;  %v1090_v11 = vsel %vm5462_vm7, %v1087_v61, %v1084_v38 }
 0x1bc   :  { %v2522_v44 = vadd.f32 %v2521_v39, %v2520_v22  ;;  %v946_v22 = vsel %vm5436_vm12, %v943_v5, %v940_v24  ;;  %v1233_v34 = vand.u32 2147483647, %v5389_v28  ;;  %3560 = vlog2.f32 %v1807_v57 }
 0x1bd   :  { %v1229_v23 = vmul.f32 0.6931472, %v3549_v60  ;;  %v1376_v7 = vadd.f32 1.0, %v1375_v52  ;;  %v1378_v30 = vand.u32 2147483647, %v5393_v15  ;;  %3562 = vpow2.f32 %v2385_v19 }
 0x1be   :  { %v2523_v3 = vrot.slane %v2522_v44, 1  ;;  %v3553_v2 = vpop.eup %3552  ;;  %v1520_v32 = vmul.f32 -0.5, %v5408_v14  ;;  %3564 = vlog2.f32 %v1952_v8  ;;  %v2097_v35 = vadd.f32 1.0, %v5458_v63 }
 0x1bf   :  { %v804_v39 = vsub.f32 0.0, %v803_v1  ;;  %v947_v33 = vadd.f32 %v946_v22, %v933_v27  ;;  %v1232_v41 = vmul.f32 %v5389_v28, %v1231_v12  ;;  %v1374_v45 = vmul.f32 0.6931472, %v3553_v2 }
 0x1c0   :  { %v5456_v20 = vadd.f32 %v2523_v3, %v2522_v44  ;;  %v1222_v46 = vmax.f32 %v1221_v25, 0.0  ;;  %vm5476_vm14 = vcmp.lt.f32.partialorder %v1233_v34, 0.0004427343  ;;  %v1366_v43 = vsub.f32 0.0, %v1365_v26  ;;  %v3555_v54 = vpop.eup %3554 }
 0x1c1   :  { %v1091_v50 = vadd.f32 %v1090_v11, %v1077_v31  ;;  %v1235_v55 = vsel %vm5476_vm14, %v1232_v41, %v1229_v23  ;;  %v1377_v38 = vmul.f32 %v5393_v15, %v1376_v7  ;;  %vm5485_vm5 = vcmp.lt.f32.partialorder %v1378_v30, 0.0004427343 }
 0x1c2   :  { %v2525_v42 = vsub.f32 0.0, %v5456_v20  ;;  %v1521_v28 = vadd.f32 1.0, %v1520_v32  ;;  %v1665_v57 = vmul.f32 -0.5, %v5414_v62  ;;  %3566 = vlog2.f32 %v2097_v35 }
 0x1c3   :  { %v805_v17 = vadd.f32 %v804_v39, %v5431_v10  ;;  %v948_v26 = vsub.f32 0.0, %v947_v33  ;;  %v1380_v31 = vsel %vm5485_vm5, %v1377_v38, %v1374_v45  ;;  %v1523_v5 = vand.u32 2147483647, %v5408_v14 }
 0x1c4   :  { %v2528_v4 = vand.u32 2147483647, %v2525_v42  ;;  %v1367_v15 = vmax.f32 %v1366_v43, 0.0  ;;  %v1511_v52 = vsub.f32 0.0, %v1510_v59  ;;  %v1519_v6 = vmul.f32 0.6931472, %v3555_v54 }
 0x1c5   :  { %v1092_v1 = vsub.f32 0.0, %v1091_v50  ;;  %v1236_v61 = vadd.f32 %v1235_v55, %v1222_v46  ;;  %v1656_v10 = vsub.f32 0.0, %v1655_v13  ;;  %v1522_v21 = vmul.f32 %v5408_v14, %v1521_v28 }
 0x1c6   :  { %v2529_v44 = vsub.f32 0.0, %v2528_v4  ;;  %v1381_v22 = vadd.f32 %v1380_v31, %v1367_v15  ;;  %v1666_v12 = vadd.f32 1.0, %v1665_v57  ;;  %v1810_v19 = vmul.f32 -0.5, %v5434_v40 }
 0x1c7   :  { %v5494_v25 = vpop.eup %3556  ;;  %v949_v2 = vadd.f32 %v948_v26, %v805_v17  ;;  %vm5503_vm10 = vcmp.lt.f32.partialorder %v1523_v5, 0.0004427343  ;;  %v1668_v59 = vand.u32 2147483647, %v5414_v62  ;;  %v1955_v11 = vmul.f32 -0.5, %v5443_v49 }
 0x1c8   :  { %v2530_v3 = vmul.f32 1.442695, %v2529_v44  ;;  %v3559_v60 = vpop.eup %3558  ;;  %v2242_v8 = vadd.f32 1.0, %v5494_v25  ;;  %v1525_v56 = vsel %vm5503_vm10, %v1522_v21, %v1519_v6  ;;  %v1237_v14 = vsub.f32 0.0, %v1236_v61 }
 0x1c9   :  { %v1664_v13 = vmul.f32 0.6931472, %v3559_v60  ;;  %v3561_v34 = vpop.eup %3560  ;;  %v1093_v23 = vadd.f32 %v1092_v1, %v949_v2  ;;  %v1512_v7 = vmax.f32 %v1511_v52, 0.0  ;;  %v1657_v30 = vmax.f32 %v1656_v10, 0.0 }
 0x1ca   :  { %3568 = vpow2.f32 %v2530_v3  ;;  %v5511_v32 = vpop.eup %3562  ;;  %v1382_v4 = vsub.f32 0.0, %v1381_v22  ;;  %v1667_v35 = vmul.f32 %v5414_v62, %v1666_v12  ;;  %v1801_v39 = vsub.f32 0.0, %v1800_v37 }
 0x1cb   :  { %3570 = vlog2.f32 %v2242_v8  ;;  %v1811_v33 = vadd.f32 1.0, %v1810_v19  ;;  %v3565_v41 = vpop.eup %3564  ;;  %v1526_v45 = vadd.f32 %v1525_v56, %v1512_v7  ;;  %vm5516_vm11 = vcmp.lt.f32.partialorder %v1668_v59, 0.0004427343 }
 0x1cc   :  { %v1813_v24 = vand.u32 2147483647, %v5434_v40  ;;  %v2387_v43 = vadd.f32 1.0, %v5511_v32  ;;  %v1670_v44 = vsel %vm5516_vm11, %v1667_v35, %v1664_v13  ;;  %v1809_v54 = vmul.f32 0.6931472, %v3561_v34 }
 0x1cd   :  { %v1956_v50 = vadd.f32 1.0, %v1955_v11  ;;  %v2100_v62 = vmul.f32 -0.5, %v5458_v63  ;;  %v1238_v16 = vadd.f32 %v1237_v14, %v1093_v23  ;;  %v1946_v37 = vsub.f32 0.0, %v1945_v9 }
 0x1ce   :  { %v1958_v55 = vand.u32 2147483647, %v5443_v49  ;;  %3572 = vlog2.f32 %v2387_v43  ;;  %v1812_v38 = vmul.f32 %v5434_v40, %v1811_v33  ;;  %v1954_v27 = vmul.f32 0.6931472, %v3565_v41 }
 0x1cf   :  { %v2245_v28 = vmul.f32 -0.5, %v5494_v25  ;;  %v3567_v57 = vpop.eup %3566  ;;  %v1383_v3 = vadd.f32 %v1382_v4, %v1238_v16  ;;  %v1671_v17 = vadd.f32 %v1670_v44, %v1657_v30  ;;  %v1802_v26 = vmax.f32 %v1801_v39, 0.0 }
 0x1d0   :  { %vm1814_vm6 = vcmp.lt.f32.partialorder %v1813_v24, 0.0004427343  ;;  %v1527_v31 = vsub.f32 0.0, %v1526_v45  ;;  %v1957_v15 = vmul.f32 %v5443_v49, %v1956_v50  ;;  %v2101_v52 = vadd.f32 1.0, %v2100_v62 }
 0x1d1   :  { %v1815_v5 = vsel %vm1814_vm6, %v1812_v38, %v1809_v54  ;;  %v1947_v9 = vmax.f32 %v1946_v37, 0.0  ;;  %vm1959_vm3 = vcmp.lt.f32.partialorder %v1958_v55, 0.0004427343  ;;  %v2091_v6 = vsub.f32 0.0, %v2090_v18 }
 0x1d2   :  { %v2103_v40 = vand.u32 2147483647, %v5458_v63  ;;  %v1960_v60 = vsel %vm1959_vm3, %v1957_v15, %v1954_v27  ;;  %v2099_v1 = vmul.f32 0.6931472, %v3567_v57  ;;  %v2246_v61 = vadd.f32 1.0, %v2245_v28 }
 0x1d3   :  { %v1672_v8 = vsub.f32 0.0, %v1671_v17  ;;  %v1816_v22 = vadd.f32 %v1815_v5, %v1802_v26  ;;  %v2248_v21 = vand.u32 2147483647, %v5494_v25  ;;  %v2390_v12 = vmul.f32 -0.5, %v5511_v32 }
 0x1d4   :  { %v1528_v19 = vadd.f32 %v1527_v31, %v1383_v3  ;;  %v2102_v2 = vmul.f32 %v5458_v63, %v2101_v52  ;;  %v1961_v36 = vadd.f32 %v1960_v60, %v1947_v9  ;;  %v2236_v29 = vsub.f32 0.0, %v2235_v48 }
 0x1d5   :  { %vm2104_vm1 = vcmp.lt.f32.partialorder %v2103_v40, 0.0004427343  ;;  %v2092_v59 = vmax.f32 %v2091_v6, 0.0  ;;  %v2247_v13 = vmul.f32 %v5494_v25, %v2246_v61  ;;  %v1817_v11 = vsub.f32 0.0, %v1816_v22 }
 0x1d6   :  { %v2105_v56 = vsel %vm2104_vm1, %v2102_v2, %v2099_v1  ;;  %v1673_v34 = vadd.f32 %v1672_v8, %v1528_v19  ;;  %vm2249_vm15 = vcmp.lt.f32.partialorder %v2248_v21, 0.0004427343  ;;  %v2391_v23 = vadd.f32 1.0, %v2390_v12 }
 0x1d7   :  { %v3569_v58 = vpop.eup %3568  ;;  %v2393_v7 = vand.u32 2147483647, %v5511_v32  ;;  %v2237_v30 = vmax.f32 %v2236_v29, 0.0  ;;  %v1962_v63 = vsub.f32 0.0, %v1961_v36  ;;  %v2106_v4 = vadd.f32 %v2105_v56, %v2092_v59 }
 0x1d8   :  { %v2532_v10 = vadd.f32 1.0, %v3569_v58  ;;  %v3571_v49 = vpop.eup %3570  ;;  %v2381_v53 = vsub.f32 0.0, %v2380_v51  ;;  %v2535_v35 = vmul.f32 -0.5, %v3569_v58  ;;  %v1818_v39 = vadd.f32 %v1817_v11, %v1673_v34 }
 0x1d9   :  { %v2244_v18 = vmul.f32 0.6931472, %v3571_v49  ;;  %v2392_v25 = vmul.f32 %v5511_v32, %v2391_v23  ;;  %vm2394_vm8 = vcmp.lt.f32.partialorder %v2393_v7, 0.0004427343  ;;  %v2107_v46 = vsub.f32 0.0, %v2106_v4 }
 0x1da   :  { %3574 = vlog2.f32 %v2532_v10  ;;  %v1963_v45 = vadd.f32 %v1962_v63, %v1818_v39  ;;  %v2382_v24 = vmax.f32 %v2381_v53, 0.0  ;;  %v2536_v44 = vadd.f32 1.0, %v2535_v35 }
 0x1db   :  { %v2250_v14 = vsel %vm2249_vm15, %v2247_v13, %v2244_v18  ;;  %v3573_v48 = vpop.eup %3572  ;;  %v2526_v62 = vsub.f32 0.0, %v2525_v42  ;;  %v2538_v47 = vand.u32 2147483647, %v3569_v58  ;;  %v2545_v3 = vand.u32 127, %v83_v0 }
 0x1dc   :  { %v2251_v33 = vadd.f32 %v2250_v14, %v2237_v30  ;;  %v2389_v41 = vmul.f32 0.6931472, %v3573_v48  ;;  %v2108_v16 = vadd.f32 %v2107_v46, %v1963_v45  ;;  %v2537_v55 = vmul.f32 %v3569_v58, %v2536_v44 }
 0x1dd   :  { %v2527_v28 = vmax.f32 %v2526_v62, 0.0  ;;  %vm2539_vm9 = vcmp.lt.f32.partialorder %v2538_v47, 0.0004427343  ;;  %vm2548_vm0 = vcmp.lt.s32.totalorder %v2545_v3, 64 }
 0x1de   :  { %v2395_v43 = vsel %vm2394_vm8, %v2392_v25, %v2389_v41  ;;  %v2252_v54 = vsub.f32 0.0, %v2251_v33 }
 0x1df   :  { %v2396_v50 = vadd.f32 %v2395_v43, %v2382_v24 }
 0x1e0   :  { %v2253_v38 = vadd.f32 %v2252_v54, %v2108_v16 }
 0x1e1   :  { %v2397_v27 = vsub.f32 0.0, %v2396_v50 }
 0x1e3   :  { %v2398_v17 = vadd.f32 %v2397_v27, %v2253_v38 }
 0x1e7   :  { %v3575_v51 = vpop.eup %3574 }
 0x1e8   :  { %v2534_v37 = vmul.f32 0.6931472, %v3575_v51 }
 0x1ea   :  { %v2540_v32 = vsel %vm2539_vm9, %v2537_v55, %v2534_v37 }
 0x1eb   :  { %v2541_v57 = vadd.f32 %v2540_v32, %v2527_v28 }
 0x1ed   :  { %v2542_v26 = vsub.f32 0.0, %v2541_v57 }
 0x1ef   :  { %v2543_v31 = vadd.f32 %v2542_v26, %v2398_v17 }
 0x1f1   :  { %v2549_v20 = vsub.f32 0.0, %v2543_v31 }
 0x1f3   :  { %v2550_v42 = vsel %vm2548_vm0, %v2549_v20, 0.0 }
 0x1f4   :  { %2551 = vst [vmem:[#allocation10] sm:$0x1] %v2550_v42 }
 0x1f5   :  { %3667 = shalt.err (!%p3664_p10)
}
 0x1f6   :  { %2561 = dma.vmem_to_hbm [thread:$0]  %s2559_s3, 16, %s5554_s4, [#allocation4]  }
 0x1f7   :  { %3682 = dma.done.wait [#allocation4], 16  }
 0x1f8   :  { %3683 = vsyncadd [#allocation4], 4294967280 }
 0x1f9   :  { %2565 = vsyncpa [#allocation3], 1 }
 0x1fa   :  { %2566 = vsyncpa [#allocation6], 1 }
 0x1fb   :  { %2567 = vsyncpa [#allocation9], 1 }
 0x1fc   :  { %2568 = vsyncpa [#allocation4], 1 }

</bundles_post_ra>
